<compile_context>
chip_gen: v7x
topology: tpu7x:2x2x1
jax: 0.10.0
libtpu: 0.0.40
codegen_flags: <defaults>
</compile_context>

<pallas_src>
import functools

import jax
import jax.numpy as jnp
from jax.experimental import pallas as pl
from jax.experimental.pallas import tpu as pltpu


# ---------------------------------------------------------------------------
# Fused multi-layer LSTM kernel (one batch shard per grid step).
# ---------------------------------------------------------------------------
def _encoder_kernel(emb_ref, wih0_ref, wihd_ref, whh_ref, b_ref,
                    h_out_ref, c_out_ref,
                    act_sc, gates_sc,
                    *, seq_len, seq_pad, t_chunk, b_block, hid_dim, emb_dim,
                    n_layers, use_wide):
    """Refs (per batch shard):
      emb_ref   : (seq_pad, b_block, E)        f32   layer-0 input
      wih0_ref  : (E, 4H)                      bf16  layer-0 W_ih^T
      wihd_ref  : (max(L-1,1), H, 4H)          bf16  W_ih^T of layers >= 1
      whh_ref   : (L, 4H|H, 4H)                bf16  W_hh^T (rows H..4H zero if wide)
      b_ref     : (L, 1, 4H)                   f32   b_ih + b_hh
      h_out_ref : (L, b_block, H)              f32   final hidden per layer
      c_out_ref : (L, b_block, H)              f32   final cell per layer
      act_sc    : VMEM (seq_pad*b_block, H) f32      inter-layer activations
      gates_sc  : VMEM (t_chunk*b_block, 4H) f32     chunked hoisted projection
    """
    H = hid_dim
    rows_per_chunk = t_chunk * b_block
    n_chunks = seq_pad // t_chunk
    state_w = 4 * H if use_wide else H

    for layer in range(n_layers):
        wih = wih0_ref[...] if layer == 0 else wihd_ref[layer - 1]     # bf16
        whh = whh_ref[layer]                                           # bf16, resident
        bias = b_ref[layer]                                            # (1, 4H) f32
        write_next = layer + 1 < n_layers

        def chunk_body(ci, carry, layer=layer, wih=wih, whh=whh, bias=bias,
                       write_next=write_next):
            h, c = carry                                               # (Bb, state_w) f32
            row0 = pl.multiple_of(ci * rows_per_chunk, rows_per_chunk)
            t0 = pl.multiple_of(ci * t_chunk, t_chunk)

            # ---- hoisted input projection for this time chunk: one MXU matmul,
            #      off the serial dependence chain of the recurrence -------------
            if layer == 0:
                x2d = (emb_ref[pl.ds(t0, t_chunk), :, :]               # (tc, Bb, E) f32
                       .reshape(rows_per_chunk, emb_dim)
                       .astype(jnp.bfloat16))
            else:
                x2d = act_sc[pl.ds(row0, rows_per_chunk), :].astype(jnp.bfloat16)
            gates_sc[...] = (jnp.dot(x2d, wih, preferred_element_type=jnp.float32)
                             + bias)

            def step(tt, carry2):
                h, c = carry2
                r = pl.multiple_of(tt * b_block, b_block)
                gates = (gates_sc[pl.ds(r, b_block), :]
                         + jnp.dot(h.astype(jnp.bfloat16), whh,
                                   preferred_element_type=jnp.float32))
                if use_wide:
                    # PyTorch gate order i|f|g|o.  Apply sigmoid/tanh once to the
                    # full 4H tile (2 EUP pushes) and align f/g/o into lanes [0:H)
                    # with XLU rolls instead of sub-128-lane slices.
                    sig = jax.nn.sigmoid(gates)
                    tnh = jnp.tanh(gates)
                    f_al = pltpu.roll(sig, 3 * H, axis=1)   # sigma(f) -> lanes [0:H)
                    o_al = pltpu.roll(sig, H, axis=1)       # sigma(o) -> lanes [0:H)
                    g_al = pltpu.roll(tnh, 2 * H, axis=1)   # tanh(g)  -> lanes [0:H)
                    c_new = f_al * c + sig * g_al           # lanes [0:H) = real cell
                    h_new = o_al * jnp.tanh(c_new)          # lanes [0:H) = real hidden
                else:
                    i_g = jax.nn.sigmoid(gates[:, 0 * H:1 * H])
                    f_g = jax.nn.sigmoid(gates[:, 1 * H:2 * H])
                    g_g = jnp.tanh(gates[:, 2 * H:3 * H])
                    o_g = jax.nn.sigmoid(gates[:, 3 * H:4 * H])
                    c_new = f_g * c + i_g * g_g
                    h_new = o_g * jnp.tanh(c_new)

                if seq_pad == seq_len:            # static: no sequence-tail padding
                    h2, c2 = h_new, c_new
                else:                             # mask out padded timesteps
                    valid = (ci * t_chunk + tt) < seq_len
                    h2 = jnp.where(valid, h_new, h)
                    c2 = jnp.where(valid, c_new, c)

                if write_next:                    # next layer's input (VMEM only)
                    g_row = pl.multiple_of(row0 + r, b_block)
                    h_nar = h2[:, :H] if use_wide else h2
                    act_sc[pl.ds(g_row, b_block), :] = h_nar
                return (h2, c2)

            return jax.lax.fori_loop(0, t_chunk, step, (h, c),
                                     unroll=min(t_chunk, 8))

        h0 = jnp.zeros((b_block, state_w), jnp.float32)
        c0 = jnp.zeros((b_block, state_w), jnp.float32)
        h_n, c_n = jax.lax.fori_loop(0, n_chunks, chunk_body, (h0, c0))

        h_out_ref[layer] = h_n[:, :H] if use_wide else h_n
        c_out_ref[layer] = c_n[:, :H] if use_wide else c_n


def _round_up(x, m):
    return ((x + m - 1) // m) * m


def _vmem_limit_bytes():
    """Generation-aware VMEM budget (~100 MiB on 128 MiB parts, ~40 MiB on v7x)."""
    phys = 128 * 1024 * 1024
    try:
        phys = int(pltpu.get_tpu_info().vmem_capacity_bytes)
    except Exception:
        pass
    return int(max(32 * 1024 * 1024,
                   min(phys - 24 * 1024 * 1024, 100 * 1024 * 1024)))


def encoder_lstm_pallas(embedded, layer_params, *, max_b_block=128,
                        gates_vmem_budget=4 * 1024 * 1024):
    """embedded: (S, B, E) f32.  Returns (hidden, cell), each (n_layers, B, H)."""
    S, B, E = embedded.shape
    L = len(layer_params)
    H = layer_params[0]["whh_t"].shape[0]

    # ---- batch shard sizing: biggest shards => fewest serial recurrence passes ----
    B8 = _round_up(B, 8)
    n_shards = max(1, -(-B8 // max_b_block))
    b_block = _round_up(-(-B8 // n_shards), 8)
    Bp = n_shards * b_block
    # TODO(synk): on v7x, when B8 is large enough, force n_shards >= 2 so the
    #             "parallel" grid axis actually feeds both TensorCores.

    # ---- time chunking of the hoisted projection (bounds gates_sc VMEM) ----
    t_chunk = int(max(1, min(S, gates_vmem_budget // (b_block * 4 * H * 4))))
    S_pad = _round_up(S, t_chunk)

    # No relayout / transpose: the BlockSpec DMA gathers the batch shard directly.
    x = jnp.pad(embedded, ((0, S_pad - S), (0, Bp - B), (0, 0)))   # (S_pad, Bp, E) f32

    use_wide = (H < 128) and ((4 * H) % 128 == 0)

    wih0 = layer_params[0]["wih_t"].astype(jnp.bfloat16)                    # (E, 4H)
    if L > 1:
        wihd = jnp.stack([lp["wih_t"] for lp in layer_params[1:]]
                         ).astype(jnp.bfloat16)                             # (L-1, H, 4H)
    else:
        wihd = jnp.zeros((1, H, 4 * H), jnp.bfloat16)                       # unused dummy
    if use_wide:   # zero rows H..4H-1: a 4H-wide hidden state needs no slicing
        whh = jnp.stack([jnp.pad(lp["whh_t"], ((0, 3 * H), (0, 0)))
                         for lp in layer_params]).astype(jnp.bfloat16)      # (L, 4H, 4H)
    else:
        whh = jnp.stack([lp["whh_t"] for lp in layer_params]).astype(jnp.bfloat16)
    bias = jnp.stack([lp["bias"] for lp in layer_params])                   # (L, 1, 4H) f32

    kernel = functools.partial(
        _encoder_kernel, seq_len=S, seq_pad=S_pad, t_chunk=t_chunk,
        b_block=b_block, hid_dim=H, emb_dim=E, n_layers=L, use_wide=use_wide)

    act_rows = S_pad * b_block if L > 1 else 8
    whh_rows = 4 * H if use_wide else H

    grid_spec = pltpu.PrefetchScalarGridSpec(
        num_scalar_prefetch=0,
        grid=(n_shards,),                                           # parallel batch shards
        in_specs=[
            pl.BlockSpec((S_pad, b_block, E), lambda b: (0, b, 0)),          # emb shard
            pl.BlockSpec((E, 4 * H), lambda b: (0, 0)),                      # layer-0 W_ih
            pl.BlockSpec((max(L - 1, 1), H, 4 * H), lambda b: (0, 0, 0)),    # deep W_ih
            pl.BlockSpec((L, whh_rows, 4 * H), lambda b: (0, 0, 0)),         # W_hh
            pl.BlockSpec((L, 1, 4 * H), lambda b: (0, 0, 0)),                # bias
        ],
        out_specs=[
            pl.BlockSpec((None, L, b_block, H), lambda b: (b, 0, 0, 0)),
            pl.BlockSpec((None, L, b_block, H), lambda b: (b, 0, 0, 0)),
        ],
        scratch_shapes=[
            # TODO(synk): store act_sc in bf16 (halves VMEM) once packed sub-tile
            #             stores at dynamic sublane offsets are confirmed on all
            #             target generations.
            pltpu.VMEM((act_rows, H), jnp.float32),                  # inter-layer acts
            pltpu.VMEM((t_chunk * b_block, 4 * H), jnp.float32),     # chunked projection
        ],
    )

    h_all, c_all = pl.pallas_call(
        kernel,
        out_shape=(
            jax.ShapeDtypeStruct((n_shards, L, b_block, H), jnp.float32),
            jax.ShapeDtypeStruct((n_shards, L, b_block, H), jnp.float32),
        ),
        grid_spec=grid_spec,
        compiler_params=pltpu.CompilerParams(
            dimension_semantics=("parallel",),     # v7x: shards split across both TCs
            vmem_limit_bytes=_vmem_limit_bytes(),
        ),
    )(x, wih0, wihd, whh, bias)

    # (n_shards, L, b_block, H) -> (L, B, H)
    h = h_all.transpose(1, 0, 2, 3).reshape(L, Bp, H)[:, :B, :]
    c = c_all.transpose(1, 0, 2, 3).reshape(L, Bp, H)[:, :B, :]
    return h, c


# ---------------------------------------------------------------------------
# Encoder: embedding lookup (XLA glue) + fused Pallas LSTM stack.
# ---------------------------------------------------------------------------
def init_encoder_params(key, input_dim, emb_dim, hid_dim, n_layers):
    params = {}
    key, ek = jax.random.split(key)
    params["embedding"] = jax.random.normal(ek, (input_dim, emb_dim), jnp.float32)

    k = 1.0 / jnp.sqrt(hid_dim)
    layers = []
    for layer in range(n_layers):
        in_dim = emb_dim if layer == 0 else hid_dim
        key, k1, k2, k3, k4 = jax.random.split(key, 5)
        wih = jax.random.uniform(k1, (4 * hid_dim, in_dim), jnp.float32, -k, k)
        whh = jax.random.uniform(k2, (4 * hid_dim, hid_dim), jnp.float32, -k, k)
        bih = jax.random.uniform(k3, (4 * hid_dim,), jnp.float32, -k, k)
        bhh = jax.random.uniform(k4, (4 * hid_dim,), jnp.float32, -k, k)
        layers.append({
            "wih_t": wih.T,                          # (in_dim, 4H)
            "whh_t": whh.T,                          # (H, 4H)
            "bias": (bih + bhh)[None, :],            # (1, 4H)
        })
    params["layers"] = layers
    return params


@jax.jit
def encoder_forward(params, src):
    """src: (seq_len, batch) int32 token ids. Returns (hidden, cell), each
    (n_layers, batch, hid_dim) — matching the PyTorch module."""
    embedded = jnp.take(params["embedding"], src, axis=0)   # (S, B, E) gather glue
    # dropout: identity (eval mode)
    return encoder_lstm_pallas(embedded, params["layers"])


# Pure-JAX reference (lax.scan). matmul_dtype=bf16 mirrors the kernel's MXU rounding.
def _encoder_reference(params, src, matmul_dtype=jnp.float32):
    embedded = jnp.take(params["embedding"], src, axis=0)
    x = embedded
    hiddens, cells = [], []
    for lp in params["layers"]:
        H = lp["whh_t"].shape[0]
        B = x.shape[1]
        wih = lp["wih_t"].astype(matmul_dtype)
        whh = lp["whh_t"].astype(matmul_dtype)
        bias = lp["bias"]

        def step(carry, x_t, wih=wih, whh=whh, bias=bias, H=H):
            h, c = carry
            gates = (jnp.dot(x_t.astype(matmul_dtype), wih,
                             preferred_element_type=jnp.float32)
                     + jnp.dot(h.astype(matmul_dtype), whh,
                               preferred_element_type=jnp.float32)
                     + bias)
            i = jax.nn.sigmoid(gates[:, 0 * H:1 * H])
            f = jax.nn.sigmoid(gates[:, 1 * H:2 * H])
            g = jnp.tanh(gates[:, 2 * H:3 * H])
            o = jax.nn.sigmoid(gates[:, 3 * H:4 * H])
            c = f * c + i * g
            h = o * jnp.tanh(c)
            return (h, c), h

        init = (jnp.zeros((B, H), jnp.float32), jnp.zeros((B, H), jnp.float32))
        (h_n, c_n), out_seq = jax.lax.scan(step, init, x)
        hiddens.append(h_n)
        cells.append(c_n)
        x = out_seq
    return jnp.stack(hiddens, 0), jnp.stack(cells, 0)


if __name__ == "__main__":
    input_dim = 50     # vocab size
    emb_dim = 32
    hid_dim = 32
    n_layers = 2
    seq_len = 8
    batch = 2

    key = jax.random.PRNGKey(0)
    pkey, skey = jax.random.split(key)
    params = init_encoder_params(pkey, input_dim, emb_dim, hid_dim, n_layers)
    src = jax.random.randint(skey, (seq_len, batch), 0, input_dim, jnp.int32)

    hidden, cell = encoder_forward(params, src)
    hidden = jax.block_until_ready(hidden)
    cell = jax.block_until_ready(cell)

    assert hidden.shape == (n_layers, batch, hid_dim)
    assert cell.shape == (n_layers, batch, hid_dim)

    # Tight check vs a reference applying the same bf16-on-MXU / f32-accumulate rounding.
    h_bf, c_bf = _encoder_reference(params, src, matmul_dtype=jnp.bfloat16)
    assert jnp.allclose(hidden, h_bf, atol=2e-3, rtol=2e-3)
    assert jnp.allclose(cell, c_bf, atol=2e-3, rtol=2e-3)

    # Loose sanity check vs the full-f32 reference (bf16 MXU inputs add ~1e-2 drift).
    h_f32, c_f32 = _encoder_reference(params, src, matmul_dtype=jnp.float32)
    assert jnp.allclose(hidden, h_f32, atol=5e-2, rtol=5e-2)
    assert jnp.allclose(cell, c_f32, atol=5e-2, rtol=5e-2)

    print("KERNEL_OK")
</pallas_src>

<mosaic_0001>
module attributes {stable_mosaic.version = 11 : i64} {
  func.func @_encoder_kernel(%arg0: i32, %arg1: memref<8x8x32xf32, #tpu.memory_space<vmem>>, %arg2: memref<32x128xbf16, #tpu.memory_space<vmem>>, %arg3: memref<1x32x128xbf16, #tpu.memory_space<vmem>>, %arg4: memref<2x128x128xbf16, #tpu.memory_space<vmem>>, %arg5: memref<2x1x128xf32, #tpu.memory_space<vmem>>, %arg6: memref<1x2x8x32xf32, #tpu.memory_space<vmem>>, %arg7: memref<1x2x8x32xf32, #tpu.memory_space<vmem>>, %arg8: memref<64x32xf32, #tpu.memory_space<vmem>>, %arg9: memref<64x128xf32, #tpu.memory_space<vmem>>) attributes {dimension_semantics = [#tpu.dimension_semantics<parallel>], iteration_bounds = array<i64: 1>, scalar_prefetch = 0 : i64, scratch_operands = 2 : i64, tpu.core_type = #tpu.core_type<tc>, window_params = [{transform_indices = @transform_0, window_bounds = array<i64: 8, 8, 32>}, {pipeline_mode = #tpu.pipeline_mode<synchronous>, transform_indices = @transform_1, window_bounds = array<i64: 32, 128>}, {pipeline_mode = #tpu.pipeline_mode<synchronous>, transform_indices = @transform_2, window_bounds = array<i64: 1, 32, 128>}, {pipeline_mode = #tpu.pipeline_mode<synchronous>, transform_indices = @transform_3, window_bounds = array<i64: 2, 128, 128>}, {pipeline_mode = #tpu.pipeline_mode<synchronous>, transform_indices = @transform_4, window_bounds = array<i64: 2, 1, 128>}, {transform_indices = @transform_5, window_bounds = array<i64: 1, 2, 8, 32>}, {transform_indices = @transform_6, window_bounds = array<i64: 1, 2, 8, 32>}]} {
    %c0 = arith.constant 0 : index
    %c0_0 = arith.constant 0 : index
    %0 = vector.load %arg2[%c0, %c0_0] : memref<32x128xbf16, #tpu.memory_space<vmem>>, vector<32x128xbf16>
    %c0_1 = arith.constant 0 : index
    %c0_2 = arith.constant 0 : index
    %c0_3 = arith.constant 0 : index
    %1 = vector.load %arg4[%c0_1, %c0_2, %c0_3] : memref<2x128x128xbf16, #tpu.memory_space<vmem>>, vector<1x128x128xbf16>
    %2 = vector.shape_cast %1 : vector<1x128x128xbf16> to vector<128x128xbf16>
    %c0_4 = arith.constant 0 : index
    %c0_5 = arith.constant 0 : index
    %c0_6 = arith.constant 0 : index
    %3 = vector.load %arg5[%c0_4, %c0_5, %c0_6] : memref<2x1x128xf32, #tpu.memory_space<vmem>>, vector<1x1x128xf32>
    %4 = vector.shape_cast %3 : vector<1x1x128xf32> to vector<1x128xf32>
    %cst = arith.constant 0.000000e+00 : f32
    %5 = vector.broadcast %cst : f32 to vector<8x128xf32>
    %cst_7 = arith.constant 0.000000e+00 : f32
    %6 = vector.broadcast %cst_7 : f32 to vector<8x128xf32>
    %c0_i32 = arith.constant 0 : i32
    %c64_i32 = arith.constant 64 : i32
    %7 = arith.muli %c0_i32, %c64_i32 : i32
    %8 = tpu.assume_multiple %7, 64 : i32
    %c8_i32 = arith.constant 8 : i32
    %9 = arith.muli %c0_i32, %c8_i32 : i32
    %10 = tpu.assume_multiple %9, 8 : i32
    %11 = arith.index_cast %10 : i32 to index
    %c0_8 = arith.constant 0 : index
    %c0_9 = arith.constant 0 : index
    %12 = vector.load %arg1[%11, %c0_8, %c0_9] : memref<8x8x32xf32, #tpu.memory_space<vmem>>, vector<8x8x32xf32>
    %13 = vector.shape_cast %12 : vector<8x8x32xf32> to vector<64x32xf32>
    %14 = arith.truncf %13 : vector<64x32xf32> to vector<64x32xbf16>
    %cst_10 = arith.constant dense<0.000000e+00> : vector<64x128xf32>
    %15 = tpu.matmul %14, %0, %cst_10 {dimension_numbers = #tpu.dot_dimension_numbers<[1], [0], [0], [1], [0, 0, 1, 1], [], []>} : vector<64x32xbf16>, vector<32x128xbf16>, vector<64x128xf32> -> vector<64x128xf32>
    %16 = vector.broadcast %4 : vector<1x128xf32> to vector<64x128xf32>
    %17 = arith.addf %15, %16 : vector<64x128xf32>
    %c0_11 = arith.constant 0 : index
    %c0_12 = arith.constant 0 : index
    %18 = vector.load %arg9[%c0_11, %c0_12] : memref<64x128xf32, #tpu.memory_space<vmem>>, vector<64x128xf32>
    tpu.vector_store %arg9[%c0_11, %c0_12], %17 {strides = array<i32>} : memref<64x128xf32, #tpu.memory_space<vmem>>, vector<64x128xf32>,
    %c0_i32_13 = arith.constant 0 : i32
    %c8_i32_14 = arith.constant 8 : i32
    %19 = arith.muli %c0_i32_13, %c8_i32_14 : i32
    %20 = tpu.assume_multiple %19, 8 : i32
    %21 = arith.index_cast %20 : i32 to index
    %c0_15 = arith.constant 0 : index
    %22 = vector.load %arg9[%21, %c0_15] : memref<64x128xf32, #tpu.memory_space<vmem>>, vector<8x128xf32>
    %23 = arith.truncf %5 : vector<8x128xf32> to vector<8x128xbf16>
    %cst_16 = arith.constant dense<0.000000e+00> : vector<8x128xf32>
    %24 = tpu.matmul %23, %2, %cst_16 {dimension_numbers = #tpu.dot_dimension_numbers<[1], [0], [0], [1], [0, 0, 1, 1], [], []>} : vector<8x128xbf16>, vector<128x128xbf16>, vector<8x128xf32> -> vector<8x128xf32>
    %25 = arith.addf %22, %24 : vector<8x128xf32>
    %26 = arith.negf %25 : vector<8x128xf32>
    %27 = math.exp %26 : vector<8x128xf32>
    %cst_17 = arith.constant 1.000000e+00 : f32
    %28 = vector.broadcast %cst_17 : f32 to vector<8x128xf32>
    %29 = arith.addf %28, %27 : vector<8x128xf32>
    %30 = arith.divf %28, %29 : vector<8x128xf32>
    %31 = math.tanh %25 : vector<8x128xf32>
    %c96_i32 = arith.constant 96 : i32
    %32 = tpu.dynamic_rotate %30 by %c96_i32 dim 1 : vector<8x128xf32>, i32 -> vector<8x128xf32>
    %c32_i32 = arith.constant 32 : i32
    %33 = tpu.dynamic_rotate %30 by %c32_i32 dim 1 : vector<8x128xf32>, i32 -> vector<8x128xf32>
    %c64_i32_18 = arith.constant 64 : i32
    %34 = tpu.dynamic_rotate %31 by %c64_i32_18 dim 1 : vector<8x128xf32>, i32 -> vector<8x128xf32>
    %35 = arith.mulf %32, %6 : vector<8x128xf32>
    %36 = arith.mulf %30, %34 : vector<8x128xf32>
    %37 = arith.addf %35, %36 : vector<8x128xf32>
    %38 = math.tanh %37 : vector<8x128xf32>
    %39 = arith.mulf %33, %38 : vector<8x128xf32>
    %40 = arith.addi %8, %20 : i32
    %41 = tpu.assume_multiple %40, 8 : i32
    %42 = vector.extract_strided_slice %39 {offsets = [0, 0], sizes = [8, 32], strides = [1, 1]} : vector<8x128xf32> to vector<8x32xf32>
    %43 = arith.index_cast %41 : i32 to index
    %c0_19 = arith.constant 0 : index
    %44 = vector.load %arg8[%43, %c0_19] : memref<64x32xf32, #tpu.memory_space<vmem>>, vector<8x32xf32>
    tpu.vector_store %arg8[%43, %c0_19], %42 {strides = array<i32>} : memref<64x32xf32, #tpu.memory_space<vmem>>, vector<8x32xf32>,
    %c1_i32 = arith.constant 1 : i32
    %c8_i32_20 = arith.constant 8 : i32
    %45 = arith.muli %c1_i32, %c8_i32_20 : i32
    %46 = tpu.assume_multiple %45, 8 : i32
    %47 = arith.index_cast %46 : i32 to index
    %c0_21 = arith.constant 0 : index
    %48 = vector.load %arg9[%47, %c0_21] : memref<64x128xf32, #tpu.memory_space<vmem>>, vector<8x128xf32>
    %49 = arith.truncf %39 : vector<8x128xf32> to vector<8x128xbf16>
    %cst_22 = arith.constant dense<0.000000e+00> : vector<8x128xf32>
    %50 = tpu.matmul %49, %2, %cst_22 {dimension_numbers = #tpu.dot_dimension_numbers<[1], [0], [0], [1], [0, 0, 1, 1], [], []>} : vector<8x128xbf16>, vector<128x128xbf16>, vector<8x128xf32> -> vector<8x128xf32>
    %51 = arith.addf %48, %50 : vector<8x128xf32>
    %52 = arith.negf %51 : vector<8x128xf32>
    %53 = math.exp %52 : vector<8x128xf32>
    %cst_23 = arith.constant 1.000000e+00 : f32
    %54 = vector.broadcast %cst_23 : f32 to vector<8x128xf32>
    %55 = arith.addf %54, %53 : vector<8x128xf32>
    %56 = arith.divf %54, %55 : vector<8x128xf32>
    %57 = math.tanh %51 : vector<8x128xf32>
    %c96_i32_24 = arith.constant 96 : i32
    %58 = tpu.dynamic_rotate %56 by %c96_i32_24 dim 1 : vector<8x128xf32>, i32 -> vector<8x128xf32>
    %c32_i32_25 = arith.constant 32 : i32
    %59 = tpu.dynamic_rotate %56 by %c32_i32_25 dim 1 : vector<8x128xf32>, i32 -> vector<8x128xf32>
    %c64_i32_26 = arith.constant 64 : i32
    %60 = tpu.dynamic_rotate %57 by %c64_i32_26 dim 1 : vector<8x128xf32>, i32 -> vector<8x128xf32>
    %61 = arith.mulf %58, %37 : vector<8x128xf32>
    %62 = arith.mulf %56, %60 : vector<8x128xf32>
    %63 = arith.addf %61, %62 : vector<8x128xf32>
    %64 = math.tanh %63 : vector<8x128xf32>
    %65 = arith.mulf %59, %64 : vector<8x128xf32>
    %66 = arith.addi %8, %46 : i32
    %67 = tpu.assume_multiple %66, 8 : i32
    %68 = vector.extract_strided_slice %65 {offsets = [0, 0], sizes = [8, 32], strides = [1, 1]} : vector<8x128xf32> to vector<8x32xf32>
    %69 = arith.index_cast %67 : i32 to index
    %c0_27 = arith.constant 0 : index
    %70 = vector.load %arg8[%69, %c0_27] : memref<64x32xf32, #tpu.memory_space<vmem>>, vector<8x32xf32>
    tpu.vector_store %arg8[%69, %c0_27], %68 {strides = array<i32>} : memref<64x32xf32, #tpu.memory_space<vmem>>, vector<8x32xf32>,
    %c2_i32 = arith.constant 2 : i32
    %c8_i32_28 = arith.constant 8 : i32
    %71 = arith.muli %c2_i32, %c8_i32_28 : i32
    %72 = tpu.assume_multiple %71, 8 : i32
    %73 = arith.index_cast %72 : i32 to index
    %c0_29 = arith.constant 0 : index
    %74 = vector.load %arg9[%73, %c0_29] : memref<64x128xf32, #tpu.memory_space<vmem>>, vector<8x128xf32>
    %75 = arith.truncf %65 : vector<8x128xf32> to vector<8x128xbf16>
    %cst_30 = arith.constant dense<0.000000e+00> : vector<8x128xf32>
    %76 = tpu.matmul %75, %2, %cst_30 {dimension_numbers = #tpu.dot_dimension_numbers<[1], [0], [0], [1], [0, 0, 1, 1], [], []>} : vector<8x128xbf16>, vector<128x128xbf16>, vector<8x128xf32> -> vector<8x128xf32>
    %77 = arith.addf %74, %76 : vector<8x128xf32>
    %78 = arith.negf %77 : vector<8x128xf32>
    %79 = math.exp %78 : vector<8x128xf32>
    %cst_31 = arith.constant 1.000000e+00 : f32
    %80 = vector.broadcast %cst_31 : f32 to vector<8x128xf32>
    %81 = arith.addf %80, %79 : vector<8x128xf32>
    %82 = arith.divf %80, %81 : vector<8x128xf32>
    %83 = math.tanh %77 : vector<8x128xf32>
    %c96_i32_32 = arith.constant 96 : i32
    %84 = tpu.dynamic_rotate %82 by %c96_i32_32 dim 1 : vector<8x128xf32>, i32 -> vector<8x128xf32>
    %c32_i32_33 = arith.constant 32 : i32
    %85 = tpu.dynamic_rotate %82 by %c32_i32_33 dim 1 : vector<8x128xf32>, i32 -> vector<8x128xf32>
    %c64_i32_34 = arith.constant 64 : i32
    %86 = tpu.dynamic_rotate %83 by %c64_i32_34 dim 1 : vector<8x128xf32>, i32 -> vector<8x128xf32>
    %87 = arith.mulf %84, %63 : vector<8x128xf32>
    %88 = arith.mulf %82, %86 : vector<8x128xf32>
    %89 = arith.addf %87, %88 : vector<8x128xf32>
    %90 = math.tanh %89 : vector<8x128xf32>
    %91 = arith.mulf %85, %90 : vector<8x128xf32>
    %92 = arith.addi %8, %72 : i32
    %93 = tpu.assume_multiple %92, 8 : i32
    %94 = vector.extract_strided_slice %91 {offsets = [0, 0], sizes = [8, 32], strides = [1, 1]} : vector<8x128xf32> to vector<8x32xf32>
    %95 = arith.index_cast %93 : i32 to index
    %c0_35 = arith.constant 0 : index
    %96 = vector.load %arg8[%95, %c0_35] : memref<64x32xf32, #tpu.memory_space<vmem>>, vector<8x32xf32>
    tpu.vector_store %arg8[%95, %c0_35], %94 {strides = array<i32>} : memref<64x32xf32, #tpu.memory_space<vmem>>, vector<8x32xf32>,
    %c3_i32 = arith.constant 3 : i32
    %c8_i32_36 = arith.constant 8 : i32
    %97 = arith.muli %c3_i32, %c8_i32_36 : i32
    %98 = tpu.assume_multiple %97, 8 : i32
    %99 = arith.index_cast %98 : i32 to index
    %c0_37 = arith.constant 0 : index
    %100 = vector.load %arg9[%99, %c0_37] : memref<64x128xf32, #tpu.memory_space<vmem>>, vector<8x128xf32>
    %101 = arith.truncf %91 : vector<8x128xf32> to vector<8x128xbf16>
    %cst_38 = arith.constant dense<0.000000e+00> : vector<8x128xf32>
    %102 = tpu.matmul %101, %2, %cst_38 {dimension_numbers = #tpu.dot_dimension_numbers<[1], [0], [0], [1], [0, 0, 1, 1], [], []>} : vector<8x128xbf16>, vector<128x128xbf16>, vector<8x128xf32> -> vector<8x128xf32>
    %103 = arith.addf %100, %102 : vector<8x128xf32>
    %104 = arith.negf %103 : vector<8x128xf32>
    %105 = math.exp %104 : vector<8x128xf32>
    %cst_39 = arith.constant 1.000000e+00 : f32
    %106 = vector.broadcast %cst_39 : f32 to vector<8x128xf32>
    %107 = arith.addf %106, %105 : vector<8x128xf32>
    %108 = arith.divf %106, %107 : vector<8x128xf32>
    %109 = math.tanh %103 : vector<8x128xf32>
    %c96_i32_40 = arith.constant 96 : i32
    %110 = tpu.dynamic_rotate %108 by %c96_i32_40 dim 1 : vector<8x128xf32>, i32 -> vector<8x128xf32>
    %c32_i32_41 = arith.constant 32 : i32
    %111 = tpu.dynamic_rotate %108 by %c32_i32_41 dim 1 : vector<8x128xf32>, i32 -> vector<8x128xf32>
    %c64_i32_42 = arith.constant 64 : i32
    %112 = tpu.dynamic_rotate %109 by %c64_i32_42 dim 1 : vector<8x128xf32>, i32 -> vector<8x128xf32>
    %113 = arith.mulf %110, %89 : vector<8x128xf32>
    %114 = arith.mulf %108, %112 : vector<8x128xf32>
    %115 = arith.addf %113, %114 : vector<8x128xf32>
    %116 = math.tanh %115 : vector<8x128xf32>
    %117 = arith.mulf %111, %116 : vector<8x128xf32>
    %118 = arith.addi %8, %98 : i32
    %119 = tpu.assume_multiple %118, 8 : i32
    %120 = vector.extract_strided_slice %117 {offsets = [0, 0], sizes = [8, 32], strides = [1, 1]} : vector<8x128xf32> to vector<8x32xf32>
    %121 = arith.index_cast %119 : i32 to index
    %c0_43 = arith.constant 0 : index
    %122 = vector.load %arg8[%121, %c0_43] : memref<64x32xf32, #tpu.memory_space<vmem>>, vector<8x32xf32>
    tpu.vector_store %arg8[%121, %c0_43], %120 {strides = array<i32>} : memref<64x32xf32, #tpu.memory_space<vmem>>, vector<8x32xf32>,
    %c4_i32 = arith.constant 4 : i32
    %c8_i32_44 = arith.constant 8 : i32
    %123 = arith.muli %c4_i32, %c8_i32_44 : i32
    %124 = tpu.assume_multiple %123, 8 : i32
    %125 = arith.index_cast %124 : i32 to index
    %c0_45 = arith.constant 0 : index
    %126 = vector.load %arg9[%125, %c0_45] : memref<64x128xf32, #tpu.memory_space<vmem>>, vector<8x128xf32>
    %127 = arith.truncf %117 : vector<8x128xf32> to vector<8x128xbf16>
    %cst_46 = arith.constant dense<0.000000e+00> : vector<8x128xf32>
    %128 = tpu.matmul %127, %2, %cst_46 {dimension_numbers = #tpu.dot_dimension_numbers<[1], [0], [0], [1], [0, 0, 1, 1], [], []>} : vector<8x128xbf16>, vector<128x128xbf16>, vector<8x128xf32> -> vector<8x128xf32>
    %129 = arith.addf %126, %128 : vector<8x128xf32>
    %130 = arith.negf %129 : vector<8x128xf32>
    %131 = math.exp %130 : vector<8x128xf32>
    %cst_47 = arith.constant 1.000000e+00 : f32
    %132 = vector.broadcast %cst_47 : f32 to vector<8x128xf32>
    %133 = arith.addf %132, %131 : vector<8x128xf32>
    %134 = arith.divf %132, %133 : vector<8x128xf32>
    %135 = math.tanh %129 : vector<8x128xf32>
    %c96_i32_48 = arith.constant 96 : i32
    %136 = tpu.dynamic_rotate %134 by %c96_i32_48 dim 1 : vector<8x128xf32>, i32 -> vector<8x128xf32>
    %c32_i32_49 = arith.constant 32 : i32
    %137 = tpu.dynamic_rotate %134 by %c32_i32_49 dim 1 : vector<8x128xf32>, i32 -> vector<8x128xf32>
    %c64_i32_50 = arith.constant 64 : i32
    %138 = tpu.dynamic_rotate %135 by %c64_i32_50 dim 1 : vector<8x128xf32>, i32 -> vector<8x128xf32>
    %139 = arith.mulf %136, %115 : vector<8x128xf32>
    %140 = arith.mulf %134, %138 : vector<8x128xf32>
    %141 = arith.addf %139, %140 : vector<8x128xf32>
    %142 = math.tanh %141 : vector<8x128xf32>
    %143 = arith.mulf %137, %142 : vector<8x128xf32>
    %144 = arith.addi %8, %124 : i32
    %145 = tpu.assume_multiple %144, 8 : i32
    %146 = vector.extract_strided_slice %143 {offsets = [0, 0], sizes = [8, 32], strides = [1, 1]} : vector<8x128xf32> to vector<8x32xf32>
    %147 = arith.index_cast %145 : i32 to index
    %c0_51 = arith.constant 0 : index
    %148 = vector.load %arg8[%147, %c0_51] : memref<64x32xf32, #tpu.memory_space<vmem>>, vector<8x32xf32>
    tpu.vector_store %arg8[%147, %c0_51], %146 {strides = array<i32>} : memref<64x32xf32, #tpu.memory_space<vmem>>, vector<8x32xf32>,
    %c5_i32 = arith.constant 5 : i32
    %c8_i32_52 = arith.constant 8 : i32
    %149 = arith.muli %c5_i32, %c8_i32_52 : i32
    %150 = tpu.assume_multiple %149, 8 : i32
    %151 = arith.index_cast %150 : i32 to index
    %c0_53 = arith.constant 0 : index
    %152 = vector.load %arg9[%151, %c0_53] : memref<64x128xf32, #tpu.memory_space<vmem>>, vector<8x128xf32>
    %153 = arith.truncf %143 : vector<8x128xf32> to vector<8x128xbf16>
    %cst_54 = arith.constant dense<0.000000e+00> : vector<8x128xf32>
    %154 = tpu.matmul %153, %2, %cst_54 {dimension_numbers = #tpu.dot_dimension_numbers<[1], [0], [0], [1], [0, 0, 1, 1], [], []>} : vector<8x128xbf16>, vector<128x128xbf16>, vector<8x128xf32> -> vector<8x128xf32>
    %155 = arith.addf %152, %154 : vector<8x128xf32>
    %156 = arith.negf %155 : vector<8x128xf32>
    %157 = math.exp %156 : vector<8x128xf32>
    %cst_55 = arith.constant 1.000000e+00 : f32
    %158 = vector.broadcast %cst_55 : f32 to vector<8x128xf32>
    %159 = arith.addf %158, %157 : vector<8x128xf32>
    %160 = arith.divf %158, %159 : vector<8x128xf32>
    %161 = math.tanh %155 : vector<8x128xf32>
    %c96_i32_56 = arith.constant 96 : i32
    %162 = tpu.dynamic_rotate %160 by %c96_i32_56 dim 1 : vector<8x128xf32>, i32 -> vector<8x128xf32>
    %c32_i32_57 = arith.constant 32 : i32
    %163 = tpu.dynamic_rotate %160 by %c32_i32_57 dim 1 : vector<8x128xf32>, i32 -> vector<8x128xf32>
    %c64_i32_58 = arith.constant 64 : i32
    %164 = tpu.dynamic_rotate %161 by %c64_i32_58 dim 1 : vector<8x128xf32>, i32 -> vector<8x128xf32>
    %165 = arith.mulf %162, %141 : vector<8x128xf32>
    %166 = arith.mulf %160, %164 : vector<8x128xf32>
    %167 = arith.addf %165, %166 : vector<8x128xf32>
    %168 = math.tanh %167 : vector<8x128xf32>
    %169 = arith.mulf %163, %168 : vector<8x128xf32>
    %170 = arith.addi %8, %150 : i32
    %171 = tpu.assume_multiple %170, 8 : i32
    %172 = vector.extract_strided_slice %169 {offsets = [0, 0], sizes = [8, 32], strides = [1, 1]} : vector<8x128xf32> to vector<8x32xf32>
    %173 = arith.index_cast %171 : i32 to index
    %c0_59 = arith.constant 0 : index
    %174 = vector.load %arg8[%173, %c0_59] : memref<64x32xf32, #tpu.memory_space<vmem>>, vector<8x32xf32>
    tpu.vector_store %arg8[%173, %c0_59], %172 {strides = array<i32>} : memref<64x32xf32, #tpu.memory_space<vmem>>, vector<8x32xf32>,
    %c6_i32 = arith.constant 6 : i32
    %c8_i32_60 = arith.constant 8 : i32
    %175 = arith.muli %c6_i32, %c8_i32_60 : i32
    %176 = tpu.assume_multiple %175, 8 : i32
    %177 = arith.index_cast %176 : i32 to index
    %c0_61 = arith.constant 0 : index
    %178 = vector.load %arg9[%177, %c0_61] : memref<64x128xf32, #tpu.memory_space<vmem>>, vector<8x128xf32>
    %179 = arith.truncf %169 : vector<8x128xf32> to vector<8x128xbf16>
    %cst_62 = arith.constant dense<0.000000e+00> : vector<8x128xf32>
    %180 = tpu.matmul %179, %2, %cst_62 {dimension_numbers = #tpu.dot_dimension_numbers<[1], [0], [0], [1], [0, 0, 1, 1], [], []>} : vector<8x128xbf16>, vector<128x128xbf16>, vector<8x128xf32> -> vector<8x128xf32>
    %181 = arith.addf %178, %180 : vector<8x128xf32>
    %182 = arith.negf %181 : vector<8x128xf32>
    %183 = math.exp %182 : vector<8x128xf32>
    %cst_63 = arith.constant 1.000000e+00 : f32
    %184 = vector.broadcast %cst_63 : f32 to vector<8x128xf32>
    %185 = arith.addf %184, %183 : vector<8x128xf32>
    %186 = arith.divf %184, %185 : vector<8x128xf32>
    %187 = math.tanh %181 : vector<8x128xf32>
    %c96_i32_64 = arith.constant 96 : i32
    %188 = tpu.dynamic_rotate %186 by %c96_i32_64 dim 1 : vector<8x128xf32>, i32 -> vector<8x128xf32>
    %c32_i32_65 = arith.constant 32 : i32
    %189 = tpu.dynamic_rotate %186 by %c32_i32_65 dim 1 : vector<8x128xf32>, i32 -> vector<8x128xf32>
    %c64_i32_66 = arith.constant 64 : i32
    %190 = tpu.dynamic_rotate %187 by %c64_i32_66 dim 1 : vector<8x128xf32>, i32 -> vector<8x128xf32>
    %191 = arith.mulf %188, %167 : vector<8x128xf32>
    %192 = arith.mulf %186, %190 : vector<8x128xf32>
    %193 = arith.addf %191, %192 : vector<8x128xf32>
    %194 = math.tanh %193 : vector<8x128xf32>
    %195 = arith.mulf %189, %194 : vector<8x128xf32>
    %196 = arith.addi %8, %176 : i32
    %197 = tpu.assume_multiple %196, 8 : i32
    %198 = vector.extract_strided_slice %195 {offsets = [0, 0], sizes = [8, 32], strides = [1, 1]} : vector<8x128xf32> to vector<8x32xf32>
    %199 = arith.index_cast %197 : i32 to index
    %c0_67 = arith.constant 0 : index
    %200 = vector.load %arg8[%199, %c0_67] : memref<64x32xf32, #tpu.memory_space<vmem>>, vector<8x32xf32>
    tpu.vector_store %arg8[%199, %c0_67], %198 {strides = array<i32>} : memref<64x32xf32, #tpu.memory_space<vmem>>, vector<8x32xf32>,
    %c7_i32 = arith.constant 7 : i32
    %c8_i32_68 = arith.constant 8 : i32
    %201 = arith.muli %c7_i32, %c8_i32_68 : i32
    %202 = tpu.assume_multiple %201, 8 : i32
    %203 = arith.index_cast %202 : i32 to index
    %c0_69 = arith.constant 0 : index
    %204 = vector.load %arg9[%203, %c0_69] : memref<64x128xf32, #tpu.memory_space<vmem>>, vector<8x128xf32>
    %205 = arith.truncf %195 : vector<8x128xf32> to vector<8x128xbf16>
    %cst_70 = arith.constant dense<0.000000e+00> : vector<8x128xf32>
    %206 = tpu.matmul %205, %2, %cst_70 {dimension_numbers = #tpu.dot_dimension_numbers<[1], [0], [0], [1], [0, 0, 1, 1], [], []>} : vector<8x128xbf16>, vector<128x128xbf16>, vector<8x128xf32> -> vector<8x128xf32>
    %207 = arith.addf %204, %206 : vector<8x128xf32>
    %208 = arith.negf %207 : vector<8x128xf32>
    %209 = math.exp %208 : vector<8x128xf32>
    %cst_71 = arith.constant 1.000000e+00 : f32
    %210 = vector.broadcast %cst_71 : f32 to vector<8x128xf32>
    %211 = arith.addf %210, %209 : vector<8x128xf32>
    %212 = arith.divf %210, %211 : vector<8x128xf32>
    %213 = math.tanh %207 : vector<8x128xf32>
    %c96_i32_72 = arith.constant 96 : i32
    %214 = tpu.dynamic_rotate %212 by %c96_i32_72 dim 1 : vector<8x128xf32>, i32 -> vector<8x128xf32>
    %c32_i32_73 = arith.constant 32 : i32
    %215 = tpu.dynamic_rotate %212 by %c32_i32_73 dim 1 : vector<8x128xf32>, i32 -> vector<8x128xf32>
    %c64_i32_74 = arith.constant 64 : i32
    %216 = tpu.dynamic_rotate %213 by %c64_i32_74 dim 1 : vector<8x128xf32>, i32 -> vector<8x128xf32>
    %217 = arith.mulf %214, %193 : vector<8x128xf32>
    %218 = arith.mulf %212, %216 : vector<8x128xf32>
    %219 = arith.addf %217, %218 : vector<8x128xf32>
    %220 = math.tanh %219 : vector<8x128xf32>
    %221 = arith.mulf %215, %220 : vector<8x128xf32>
    %222 = arith.addi %8, %202 : i32
    %223 = tpu.assume_multiple %222, 8 : i32
    %224 = vector.extract_strided_slice %221 {offsets = [0, 0], sizes = [8, 32], strides = [1, 1]} : vector<8x128xf32> to vector<8x32xf32>
    %225 = arith.index_cast %223 : i32 to index
    %c0_75 = arith.constant 0 : index
    %226 = vector.load %arg8[%225, %c0_75] : memref<64x32xf32, #tpu.memory_space<vmem>>, vector<8x32xf32>
    tpu.vector_store %arg8[%225, %c0_75], %224 {strides = array<i32>} : memref<64x32xf32, #tpu.memory_space<vmem>>, vector<8x32xf32>,
    %c8_i32_76 = arith.constant 8 : i32
    %c1_i32_77 = arith.constant 1 : i32
    %227 = vector.extract_strided_slice %221 {offsets = [0, 0], sizes = [8, 32], strides = [1, 1]} : vector<8x128xf32> to vector<8x32xf32>
    %c0_78 = arith.constant 0 : index
    %c0_79 = arith.constant 0 : index
    %c0_80 = arith.constant 0 : index
    %c0_81 = arith.constant 0 : index
    %228 = vector.load %arg6[%c0_78, %c0_79, %c0_80, %c0_81] : memref<1x2x8x32xf32, #tpu.memory_space<vmem>>, vector<1x1x8x32xf32>
    %229 = vector.shape_cast %228 : vector<1x1x8x32xf32> to vector<8x32xf32>
    %230 = vector.shape_cast %227 : vector<8x32xf32> to vector<1x1x8x32xf32>
    tpu.vector_store %arg6[%c0_78, %c0_79, %c0_80, %c0_81], %230 {strides = array<i32>} : memref<1x2x8x32xf32, #tpu.memory_space<vmem>>, vector<1x1x8x32xf32>,
    %231 = vector.extract_strided_slice %219 {offsets = [0, 0], sizes = [8, 32], strides = [1, 1]} : vector<8x128xf32> to vector<8x32xf32>
    %c0_82 = arith.constant 0 : index
    %c0_83 = arith.constant 0 : index
    %c0_84 = arith.constant 0 : index
    %c0_85 = arith.constant 0 : index
    %232 = vector.load %arg7[%c0_82, %c0_83, %c0_84, %c0_85] : memref<1x2x8x32xf32, #tpu.memory_space<vmem>>, vector<1x1x8x32xf32>
    %233 = vector.shape_cast %232 : vector<1x1x8x32xf32> to vector<8x32xf32>
    %234 = vector.shape_cast %231 : vector<8x32xf32> to vector<1x1x8x32xf32>
    tpu.vector_store %arg7[%c0_82, %c0_83, %c0_84, %c0_85], %234 {strides = array<i32>} : memref<1x2x8x32xf32, #tpu.memory_space<vmem>>, vector<1x1x8x32xf32>,
    %c0_86 = arith.constant 0 : index
    %c0_87 = arith.constant 0 : index
    %c0_88 = arith.constant 0 : index
    %235 = vector.load %arg3[%c0_86, %c0_87, %c0_88] : memref<1x32x128xbf16, #tpu.memory_space<vmem>>, vector<1x32x128xbf16>
    %236 = vector.shape_cast %235 : vector<1x32x128xbf16> to vector<32x128xbf16>
    %c1 = arith.constant 1 : index
    %c0_89 = arith.constant 0 : index
    %c0_90 = arith.constant 0 : index
    %237 = vector.load %arg4[%c1, %c0_89, %c0_90] : memref<2x128x128xbf16, #tpu.memory_space<vmem>>, vector<1x128x128xbf16>
    %238 = vector.shape_cast %237 : vector<1x128x128xbf16> to vector<128x128xbf16>
    %c1_91 = arith.constant 1 : index
    %c0_92 = arith.constant 0 : index
    %c0_93 = arith.constant 0 : index
    %239 = vector.load %arg5[%c1_91, %c0_92, %c0_93] : memref<2x1x128xf32, #tpu.memory_space<vmem>>, vector<1x1x128xf32>
    %240 = vector.shape_cast %239 : vector<1x1x128xf32> to vector<1x128xf32>
    %cst_94 = arith.constant 0.000000e+00 : f32
    %241 = vector.broadcast %cst_94 : f32 to vector<8x128xf32>
    %cst_95 = arith.constant 0.000000e+00 : f32
    %242 = vector.broadcast %cst_95 : f32 to vector<8x128xf32>
    %c0_i32_96 = arith.constant 0 : i32
    %c64_i32_97 = arith.constant 64 : i32
    %243 = arith.muli %c0_i32_96, %c64_i32_97 : i32
    %244 = tpu.assume_multiple %243, 64 : i32
    %245 = arith.index_cast %244 : i32 to index
    %c0_98 = arith.constant 0 : index
    %246 = vector.load %arg8[%245, %c0_98] : memref<64x32xf32, #tpu.memory_space<vmem>>, vector<64x32xf32>
    %247 = arith.truncf %246 : vector<64x32xf32> to vector<64x32xbf16>
    %cst_99 = arith.constant dense<0.000000e+00> : vector<64x128xf32>
    %248 = tpu.matmul %247, %236, %cst_99 {dimension_numbers = #tpu.dot_dimension_numbers<[1], [0], [0], [1], [0, 0, 1, 1], [], []>} : vector<64x32xbf16>, vector<32x128xbf16>, vector<64x128xf32> -> vector<64x128xf32>
    %249 = vector.broadcast %240 : vector<1x128xf32> to vector<64x128xf32>
    %250 = arith.addf %248, %249 : vector<64x128xf32>
    %c0_100 = arith.constant 0 : index
    %c0_101 = arith.constant 0 : index
    %251 = vector.load %arg9[%c0_100, %c0_101] : memref<64x128xf32, #tpu.memory_space<vmem>>, vector<64x128xf32>
    tpu.vector_store %arg9[%c0_100, %c0_101], %250 {strides = array<i32>} : memref<64x128xf32, #tpu.memory_space<vmem>>, vector<64x128xf32>,
    %c0_i32_102 = arith.constant 0 : i32
    %c8_i32_103 = arith.constant 8 : i32
    %252 = arith.muli %c0_i32_102, %c8_i32_103 : i32
    %253 = tpu.assume_multiple %252, 8 : i32
    %254 = arith.index_cast %253 : i32 to index
    %c0_104 = arith.constant 0 : index
    %255 = vector.load %arg9[%254, %c0_104] : memref<64x128xf32, #tpu.memory_space<vmem>>, vector<8x128xf32>
    %256 = arith.truncf %241 : vector<8x128xf32> to vector<8x128xbf16>
    %cst_105 = arith.constant dense<0.000000e+00> : vector<8x128xf32>
    %257 = tpu.matmul %256, %238, %cst_105 {dimension_numbers = #tpu.dot_dimension_numbers<[1], [0], [0], [1], [0, 0, 1, 1], [], []>} : vector<8x128xbf16>, vector<128x128xbf16>, vector<8x128xf32> -> vector<8x128xf32>
    %258 = arith.addf %255, %257 : vector<8x128xf32>
    %259 = arith.negf %258 : vector<8x128xf32>
    %260 = math.exp %259 : vector<8x128xf32>
    %cst_106 = arith.constant 1.000000e+00 : f32
    %261 = vector.broadcast %cst_106 : f32 to vector<8x128xf32>
    %262 = arith.addf %261, %260 : vector<8x128xf32>
    %263 = arith.divf %261, %262 : vector<8x128xf32>
    %264 = math.tanh %258 : vector<8x128xf32>
    %c96_i32_107 = arith.constant 96 : i32
    %265 = tpu.dynamic_rotate %263 by %c96_i32_107 dim 1 : vector<8x128xf32>, i32 -> vector<8x128xf32>
    %c32_i32_108 = arith.constant 32 : i32
    %266 = tpu.dynamic_rotate %263 by %c32_i32_108 dim 1 : vector<8x128xf32>, i32 -> vector<8x128xf32>
    %c64_i32_109 = arith.constant 64 : i32
    %267 = tpu.dynamic_rotate %264 by %c64_i32_109 dim 1 : vector<8x128xf32>, i32 -> vector<8x128xf32>
    %268 = arith.mulf %265, %242 : vector<8x128xf32>
    %269 = arith.mulf %263, %267 : vector<8x128xf32>
    %270 = arith.addf %268, %269 : vector<8x128xf32>
    %271 = math.tanh %270 : vector<8x128xf32>
    %272 = arith.mulf %266, %271 : vector<8x128xf32>
    %c1_i32_110 = arith.constant 1 : i32
    %c8_i32_111 = arith.constant 8 : i32
    %273 = arith.muli %c1_i32_110, %c8_i32_111 : i32
    %274 = tpu.assume_multiple %273, 8 : i32
    %275 = arith.index_cast %274 : i32 to index
    %c0_112 = arith.constant 0 : index
    %276 = vector.load %arg9[%275, %c0_112] : memref<64x128xf32, #tpu.memory_space<vmem>>, vector<8x128xf32>
    %277 = arith.truncf %272 : vector<8x128xf32> to vector<8x128xbf16>
    %cst_113 = arith.constant dense<0.000000e+00> : vector<8x128xf32>
    %278 = tpu.matmul %277, %238, %cst_113 {dimension_numbers = #tpu.dot_dimension_numbers<[1], [0], [0], [1], [0, 0, 1, 1], [], []>} : vector<8x128xbf16>, vector<128x128xbf16>, vector<8x128xf32> -> vector<8x128xf32>
    %279 = arith.addf %276, %278 : vector<8x128xf32>
    %280 = arith.negf %279 : vector<8x128xf32>
    %281 = math.exp %280 : vector<8x128xf32>
    %cst_114 = arith.constant 1.000000e+00 : f32
    %282 = vector.broadcast %cst_114 : f32 to vector<8x128xf32>
    %283 = arith.addf %282, %281 : vector<8x128xf32>
    %284 = arith.divf %282, %283 : vector<8x128xf32>
    %285 = math.tanh %279 : vector<8x128xf32>
    %c96_i32_115 = arith.constant 96 : i32
    %286 = tpu.dynamic_rotate %284 by %c96_i32_115 dim 1 : vector<8x128xf32>, i32 -> vector<8x128xf32>
    %c32_i32_116 = arith.constant 32 : i32
    %287 = tpu.dynamic_rotate %284 by %c32_i32_116 dim 1 : vector<8x128xf32>, i32 -> vector<8x128xf32>
    %c64_i32_117 = arith.constant 64 : i32
    %288 = tpu.dynamic_rotate %285 by %c64_i32_117 dim 1 : vector<8x128xf32>, i32 -> vector<8x128xf32>
    %289 = arith.mulf %286, %270 : vector<8x128xf32>
    %290 = arith.mulf %284, %288 : vector<8x128xf32>
    %291 = arith.addf %289, %290 : vector<8x128xf32>
    %292 = math.tanh %291 : vector<8x128xf32>
    %293 = arith.mulf %287, %292 : vector<8x128xf32>
    %c2_i32_118 = arith.constant 2 : i32
    %c8_i32_119 = arith.constant 8 : i32
    %294 = arith.muli %c2_i32_118, %c8_i32_119 : i32
    %295 = tpu.assume_multiple %294, 8 : i32
    %296 = arith.index_cast %295 : i32 to index
    %c0_120 = arith.constant 0 : index
    %297 = vector.load %arg9[%296, %c0_120] : memref<64x128xf32, #tpu.memory_space<vmem>>, vector<8x128xf32>
    %298 = arith.truncf %293 : vector<8x128xf32> to vector<8x128xbf16>
    %cst_121 = arith.constant dense<0.000000e+00> : vector<8x128xf32>
    %299 = tpu.matmul %298, %238, %cst_121 {dimension_numbers = #tpu.dot_dimension_numbers<[1], [0], [0], [1], [0, 0, 1, 1], [], []>} : vector<8x128xbf16>, vector<128x128xbf16>, vector<8x128xf32> -> vector<8x128xf32>
    %300 = arith.addf %297, %299 : vector<8x128xf32>
    %301 = arith.negf %300 : vector<8x128xf32>
    %302 = math.exp %301 : vector<8x128xf32>
    %cst_122 = arith.constant 1.000000e+00 : f32
    %303 = vector.broadcast %cst_122 : f32 to vector<8x128xf32>
    %304 = arith.addf %303, %302 : vector<8x128xf32>
    %305 = arith.divf %303, %304 : vector<8x128xf32>
    %306 = math.tanh %300 : vector<8x128xf32>
    %c96_i32_123 = arith.constant 96 : i32
    %307 = tpu.dynamic_rotate %305 by %c96_i32_123 dim 1 : vector<8x128xf32>, i32 -> vector<8x128xf32>
    %c32_i32_124 = arith.constant 32 : i32
    %308 = tpu.dynamic_rotate %305 by %c32_i32_124 dim 1 : vector<8x128xf32>, i32 -> vector<8x128xf32>
    %c64_i32_125 = arith.constant 64 : i32
    %309 = tpu.dynamic_rotate %306 by %c64_i32_125 dim 1 : vector<8x128xf32>, i32 -> vector<8x128xf32>
    %310 = arith.mulf %307, %291 : vector<8x128xf32>
    %311 = arith.mulf %305, %309 : vector<8x128xf32>
    %312 = arith.addf %310, %311 : vector<8x128xf32>
    %313 = math.tanh %312 : vector<8x128xf32>
    %314 = arith.mulf %308, %313 : vector<8x128xf32>
    %c3_i32_126 = arith.constant 3 : i32
    %c8_i32_127 = arith.constant 8 : i32
    %315 = arith.muli %c3_i32_126, %c8_i32_127 : i32
    %316 = tpu.assume_multiple %315, 8 : i32
    %317 = arith.index_cast %316 : i32 to index
    %c0_128 = arith.constant 0 : index
    %318 = vector.load %arg9[%317, %c0_128] : memref<64x128xf32, #tpu.memory_space<vmem>>, vector<8x128xf32>
    %319 = arith.truncf %314 : vector<8x128xf32> to vector<8x128xbf16>
    %cst_129 = arith.constant dense<0.000000e+00> : vector<8x128xf32>
    %320 = tpu.matmul %319, %238, %cst_129 {dimension_numbers = #tpu.dot_dimension_numbers<[1], [0], [0], [1], [0, 0, 1, 1], [], []>} : vector<8x128xbf16>, vector<128x128xbf16>, vector<8x128xf32> -> vector<8x128xf32>
    %321 = arith.addf %318, %320 : vector<8x128xf32>
    %322 = arith.negf %321 : vector<8x128xf32>
    %323 = math.exp %322 : vector<8x128xf32>
    %cst_130 = arith.constant 1.000000e+00 : f32
    %324 = vector.broadcast %cst_130 : f32 to vector<8x128xf32>
    %325 = arith.addf %324, %323 : vector<8x128xf32>
    %326 = arith.divf %324, %325 : vector<8x128xf32>
    %327 = math.tanh %321 : vector<8x128xf32>
    %c96_i32_131 = arith.constant 96 : i32
    %328 = tpu.dynamic_rotate %326 by %c96_i32_131 dim 1 : vector<8x128xf32>, i32 -> vector<8x128xf32>
    %c32_i32_132 = arith.constant 32 : i32
    %329 = tpu.dynamic_rotate %326 by %c32_i32_132 dim 1 : vector<8x128xf32>, i32 -> vector<8x128xf32>
    %c64_i32_133 = arith.constant 64 : i32
    %330 = tpu.dynamic_rotate %327 by %c64_i32_133 dim 1 : vector<8x128xf32>, i32 -> vector<8x128xf32>
    %331 = arith.mulf %328, %312 : vector<8x128xf32>
    %332 = arith.mulf %326, %330 : vector<8x128xf32>
    %333 = arith.addf %331, %332 : vector<8x128xf32>
    %334 = math.tanh %333 : vector<8x128xf32>
    %335 = arith.mulf %329, %334 : vector<8x128xf32>
    %c4_i32_134 = arith.constant 4 : i32
    %c8_i32_135 = arith.constant 8 : i32
    %336 = arith.muli %c4_i32_134, %c8_i32_135 : i32
    %337 = tpu.assume_multiple %336, 8 : i32
    %338 = arith.index_cast %337 : i32 to index
    %c0_136 = arith.constant 0 : index
    %339 = vector.load %arg9[%338, %c0_136] : memref<64x128xf32, #tpu.memory_space<vmem>>, vector<8x128xf32>
    %340 = arith.truncf %335 : vector<8x128xf32> to vector<8x128xbf16>
    %cst_137 = arith.constant dense<0.000000e+00> : vector<8x128xf32>
    %341 = tpu.matmul %340, %238, %cst_137 {dimension_numbers = #tpu.dot_dimension_numbers<[1], [0], [0], [1], [0, 0, 1, 1], [], []>} : vector<8x128xbf16>, vector<128x128xbf16>, vector<8x128xf32> -> vector<8x128xf32>
    %342 = arith.addf %339, %341 : vector<8x128xf32>
    %343 = arith.negf %342 : vector<8x128xf32>
    %344 = math.exp %343 : vector<8x128xf32>
    %cst_138 = arith.constant 1.000000e+00 : f32
    %345 = vector.broadcast %cst_138 : f32 to vector<8x128xf32>
    %346 = arith.addf %345, %344 : vector<8x128xf32>
    %347 = arith.divf %345, %346 : vector<8x128xf32>
    %348 = math.tanh %342 : vector<8x128xf32>
    %c96_i32_139 = arith.constant 96 : i32
    %349 = tpu.dynamic_rotate %347 by %c96_i32_139 dim 1 : vector<8x128xf32>, i32 -> vector<8x128xf32>
    %c32_i32_140 = arith.constant 32 : i32
    %350 = tpu.dynamic_rotate %347 by %c32_i32_140 dim 1 : vector<8x128xf32>, i32 -> vector<8x128xf32>
    %c64_i32_141 = arith.constant 64 : i32
    %351 = tpu.dynamic_rotate %348 by %c64_i32_141 dim 1 : vector<8x128xf32>, i32 -> vector<8x128xf32>
    %352 = arith.mulf %349, %333 : vector<8x128xf32>
    %353 = arith.mulf %347, %351 : vector<8x128xf32>
    %354 = arith.addf %352, %353 : vector<8x128xf32>
    %355 = math.tanh %354 : vector<8x128xf32>
    %356 = arith.mulf %350, %355 : vector<8x128xf32>
    %c5_i32_142 = arith.constant 5 : i32
    %c8_i32_143 = arith.constant 8 : i32
    %357 = arith.muli %c5_i32_142, %c8_i32_143 : i32
    %358 = tpu.assume_multiple %357, 8 : i32
    %359 = arith.index_cast %358 : i32 to index
    %c0_144 = arith.constant 0 : index
    %360 = vector.load %arg9[%359, %c0_144] : memref<64x128xf32, #tpu.memory_space<vmem>>, vector<8x128xf32>
    %361 = arith.truncf %356 : vector<8x128xf32> to vector<8x128xbf16>
    %cst_145 = arith.constant dense<0.000000e+00> : vector<8x128xf32>
    %362 = tpu.matmul %361, %238, %cst_145 {dimension_numbers = #tpu.dot_dimension_numbers<[1], [0], [0], [1], [0, 0, 1, 1], [], []>} : vector<8x128xbf16>, vector<128x128xbf16>, vector<8x128xf32> -> vector<8x128xf32>
    %363 = arith.addf %360, %362 : vector<8x128xf32>
    %364 = arith.negf %363 : vector<8x128xf32>
    %365 = math.exp %364 : vector<8x128xf32>
    %cst_146 = arith.constant 1.000000e+00 : f32
    %366 = vector.broadcast %cst_146 : f32 to vector<8x128xf32>
    %367 = arith.addf %366, %365 : vector<8x128xf32>
    %368 = arith.divf %366, %367 : vector<8x128xf32>
    %369 = math.tanh %363 : vector<8x128xf32>
    %c96_i32_147 = arith.constant 96 : i32
    %370 = tpu.dynamic_rotate %368 by %c96_i32_147 dim 1 : vector<8x128xf32>, i32 -> vector<8x128xf32>
    %c32_i32_148 = arith.constant 32 : i32
    %371 = tpu.dynamic_rotate %368 by %c32_i32_148 dim 1 : vector<8x128xf32>, i32 -> vector<8x128xf32>
    %c64_i32_149 = arith.constant 64 : i32
    %372 = tpu.dynamic_rotate %369 by %c64_i32_149 dim 1 : vector<8x128xf32>, i32 -> vector<8x128xf32>
    %373 = arith.mulf %370, %354 : vector<8x128xf32>
    %374 = arith.mulf %368, %372 : vector<8x128xf32>
    %375 = arith.addf %373, %374 : vector<8x128xf32>
    %376 = math.tanh %375 : vector<8x128xf32>
    %377 = arith.mulf %371, %376 : vector<8x128xf32>
    %c6_i32_150 = arith.constant 6 : i32
    %c8_i32_151 = arith.constant 8 : i32
    %378 = arith.muli %c6_i32_150, %c8_i32_151 : i32
    %379 = tpu.assume_multiple %378, 8 : i32
    %380 = arith.index_cast %379 : i32 to index
    %c0_152 = arith.constant 0 : index
    %381 = vector.load %arg9[%380, %c0_152] : memref<64x128xf32, #tpu.memory_space<vmem>>, vector<8x128xf32>
    %382 = arith.truncf %377 : vector<8x128xf32> to vector<8x128xbf16>
    %cst_153 = arith.constant dense<0.000000e+00> : vector<8x128xf32>
    %383 = tpu.matmul %382, %238, %cst_153 {dimension_numbers = #tpu.dot_dimension_numbers<[1], [0], [0], [1], [0, 0, 1, 1], [], []>} : vector<8x128xbf16>, vector<128x128xbf16>, vector<8x128xf32> -> vector<8x128xf32>
    %384 = arith.addf %381, %383 : vector<8x128xf32>
    %385 = arith.negf %384 : vector<8x128xf32>
    %386 = math.exp %385 : vector<8x128xf32>
    %cst_154 = arith.constant 1.000000e+00 : f32
    %387 = vector.broadcast %cst_154 : f32 to vector<8x128xf32>
    %388 = arith.addf %387, %386 : vector<8x128xf32>
    %389 = arith.divf %387, %388 : vector<8x128xf32>
    %390 = math.tanh %384 : vector<8x128xf32>
    %c96_i32_155 = arith.constant 96 : i32
    %391 = tpu.dynamic_rotate %389 by %c96_i32_155 dim 1 : vector<8x128xf32>, i32 -> vector<8x128xf32>
    %c32_i32_156 = arith.constant 32 : i32
    %392 = tpu.dynamic_rotate %389 by %c32_i32_156 dim 1 : vector<8x128xf32>, i32 -> vector<8x128xf32>
    %c64_i32_157 = arith.constant 64 : i32
    %393 = tpu.dynamic_rotate %390 by %c64_i32_157 dim 1 : vector<8x128xf32>, i32 -> vector<8x128xf32>
    %394 = arith.mulf %391, %375 : vector<8x128xf32>
    %395 = arith.mulf %389, %393 : vector<8x128xf32>
    %396 = arith.addf %394, %395 : vector<8x128xf32>
    %397 = math.tanh %396 : vector<8x128xf32>
    %398 = arith.mulf %392, %397 : vector<8x128xf32>
    %c7_i32_158 = arith.constant 7 : i32
    %c8_i32_159 = arith.constant 8 : i32
    %399 = arith.muli %c7_i32_158, %c8_i32_159 : i32
    %400 = tpu.assume_multiple %399, 8 : i32
    %401 = arith.index_cast %400 : i32 to index
    %c0_160 = arith.constant 0 : index
    %402 = vector.load %arg9[%401, %c0_160] : memref<64x128xf32, #tpu.memory_space<vmem>>, vector<8x128xf32>
    %403 = arith.truncf %398 : vector<8x128xf32> to vector<8x128xbf16>
    %cst_161 = arith.constant dense<0.000000e+00> : vector<8x128xf32>
    %404 = tpu.matmul %403, %238, %cst_161 {dimension_numbers = #tpu.dot_dimension_numbers<[1], [0], [0], [1], [0, 0, 1, 1], [], []>} : vector<8x128xbf16>, vector<128x128xbf16>, vector<8x128xf32> -> vector<8x128xf32>
    %405 = arith.addf %402, %404 : vector<8x128xf32>
    %406 = arith.negf %405 : vector<8x128xf32>
    %407 = math.exp %406 : vector<8x128xf32>
    %cst_162 = arith.constant 1.000000e+00 : f32
    %408 = vector.broadcast %cst_162 : f32 to vector<8x128xf32>
    %409 = arith.addf %408, %407 : vector<8x128xf32>
    %410 = arith.divf %408, %409 : vector<8x128xf32>
    %411 = math.tanh %405 : vector<8x128xf32>
    %c96_i32_163 = arith.constant 96 : i32
    %412 = tpu.dynamic_rotate %410 by %c96_i32_163 dim 1 : vector<8x128xf32>, i32 -> vector<8x128xf32>
    %c32_i32_164 = arith.constant 32 : i32
    %413 = tpu.dynamic_rotate %410 by %c32_i32_164 dim 1 : vector<8x128xf32>, i32 -> vector<8x128xf32>
    %c64_i32_165 = arith.constant 64 : i32
    %414 = tpu.dynamic_rotate %411 by %c64_i32_165 dim 1 : vector<8x128xf32>, i32 -> vector<8x128xf32>
    %415 = arith.mulf %412, %396 : vector<8x128xf32>
    %416 = arith.mulf %410, %414 : vector<8x128xf32>
    %417 = arith.addf %415, %416 : vector<8x128xf32>
    %418 = math.tanh %417 : vector<8x128xf32>
    %419 = arith.mulf %413, %418 : vector<8x128xf32>
    %c8_i32_166 = arith.constant 8 : i32
    %c1_i32_167 = arith.constant 1 : i32
    %420 = vector.extract_strided_slice %419 {offsets = [0, 0], sizes = [8, 32], strides = [1, 1]} : vector<8x128xf32> to vector<8x32xf32>
    %c0_168 = arith.constant 0 : index
    %c1_169 = arith.constant 1 : index
    %c0_170 = arith.constant 0 : index
    %c0_171 = arith.constant 0 : index
    %421 = vector.load %arg6[%c0_168, %c1_169, %c0_170, %c0_171] : memref<1x2x8x32xf32, #tpu.memory_space<vmem>>, vector<1x1x8x32xf32>
    %422 = vector.shape_cast %421 : vector<1x1x8x32xf32> to vector<8x32xf32>
    %423 = vector.shape_cast %420 : vector<8x32xf32> to vector<1x1x8x32xf32>
    tpu.vector_store %arg6[%c0_168, %c1_169, %c0_170, %c0_171], %423 {strides = array<i32>} : memref<1x2x8x32xf32, #tpu.memory_space<vmem>>, vector<1x1x8x32xf32>,
    %424 = vector.extract_strided_slice %417 {offsets = [0, 0], sizes = [8, 32], strides = [1, 1]} : vector<8x128xf32> to vector<8x32xf32>
    %c0_172 = arith.constant 0 : index
    %c1_173 = arith.constant 1 : index
    %c0_174 = arith.constant 0 : index
    %c0_175 = arith.constant 0 : index
    %425 = vector.load %arg7[%c0_172, %c1_173, %c0_174, %c0_175] : memref<1x2x8x32xf32, #tpu.memory_space<vmem>>, vector<1x1x8x32xf32>
    %426 = vector.shape_cast %425 : vector<1x1x8x32xf32> to vector<8x32xf32>
    %427 = vector.shape_cast %424 : vector<8x32xf32> to vector<1x1x8x32xf32>
    tpu.vector_store %arg7[%c0_172, %c1_173, %c0_174, %c0_175], %427 {strides = array<i32>} : memref<1x2x8x32xf32, #tpu.memory_space<vmem>>, vector<1x1x8x32xf32>,
    return
  }
  func.func @transform_0(%arg0: i32) -> (i32, i32, i32) {
    %c0_i32 = arith.constant 0 : i32
    %c0_i32_0 = arith.constant 0 : i32
    %c0_i32_1 = arith.constant 0 : i32
    return %c0_i32, %arg0, %c0_i32_0 : i32, i32, i32
  }
  func.func @transform_1(%arg0: i32) -> (i32, i32) {
    %c0_i32 = arith.constant 0 : i32
    %c0_i32_0 = arith.constant 0 : i32
    %c0_i32_1 = arith.constant 0 : i32
    return %c0_i32, %c0_i32_0 : i32, i32
  }
  func.func @transform_2(%arg0: i32) -> (i32, i32, i32) {
    %c0_i32 = arith.constant 0 : i32
    %c0_i32_0 = arith.constant 0 : i32
    %c0_i32_1 = arith.constant 0 : i32
    %c0_i32_2 = arith.constant 0 : i32
    return %c0_i32, %c0_i32_0, %c0_i32_1 : i32, i32, i32
  }
  func.func @transform_3(%arg0: i32) -> (i32, i32, i32) {
    %c0_i32 = arith.constant 0 : i32
    %c0_i32_0 = arith.constant 0 : i32
    %c0_i32_1 = arith.constant 0 : i32
    %c0_i32_2 = arith.constant 0 : i32
    return %c0_i32, %c0_i32_0, %c0_i32_1 : i32, i32, i32
  }
  func.func @transform_4(%arg0: i32) -> (i32, i32, i32) {
    %c0_i32 = arith.constant 0 : i32
    %c0_i32_0 = arith.constant 0 : i32
    %c0_i32_1 = arith.constant 0 : i32
    %c0_i32_2 = arith.constant 0 : i32
    return %c0_i32, %c0_i32_0, %c0_i32_1 : i32, i32, i32
  }
  func.func @transform_5(%arg0: i32) -> (i32, i32, i32, i32) {
    %c0_i32 = arith.constant 0 : i32
    %c0_i32_0 = arith.constant 0 : i32
    %c0_i32_1 = arith.constant 0 : i32
    %c0_i32_2 = arith.constant 0 : i32
    return %arg0, %c0_i32, %c0_i32_0, %c0_i32_1 : i32, i32, i32, i32
  }
  func.func @transform_6(%arg0: i32) -> (i32, i32, i32, i32) {
    %c0_i32 = arith.constant 0 : i32
    %c0_i32_0 = arith.constant 0 : i32
    %c0_i32_1 = arith.constant 0 : i32
    %c0_i32_2 = arith.constant 0 : i32
    return %arg0, %c0_i32, %c0_i32_0, %c0_i32_1 : i32, i32, i32, i32
  }
}

</mosaic_0001>

<bundles_post_ra>
// kernel: encoder_forward.1
= control target key start
LH: loop header
LB: loop body
LE: loop exit
PB: predicated region body
PF: predicated region fallthrough
CT: control target
= control target key end

     0   :  { %12 = vsyncpa [#allocation5], 0  ;;  %s3013_s0 = inlined_call_operand.hbm [shape: f32[8,8,32], index: 0, kind: input, shape index: {}]   ;;  %s3014_s1 = inlined_call_operand.hbm [shape: bf16[32,128], index: 1, kind: input, shape index: {}]   ;;  %s3015_s2 = inlined_call_operand.hbm [shape: bf16[1,32,128], index: 2, kind: input, shape index: {}]   ;;  %s3016_s3 = inlined_call_operand.hbm [shape: bf16[2,128,128], index: 3, kind: input, shape index: {}]   ;;  %s3017_s4 = inlined_call_operand.hbm [shape: f32[2,1,128], index: 4, kind: input, shape index: {}]   ;;  %s3018_s5 = inlined_call_operand.hbm [shape: f32[1,2,8,32], index: 5, kind: output, shape index: {0}]   ;;  %s3019_s6 = inlined_call_operand.hbm [shape: f32[1,2,8,32], index: 6, kind: output, shape index: {1}]  }
   0x1   :  { %13 = vsyncpa [#allocation8], 0 }
   0x2   :  { %14 = vsyncpa [#allocation11], 0 }
   0x3   :  { %15 = vsyncpa [#allocation6], 0 }
   0x4   :  { %16 = vsyncpa [#allocation15], 0  ;;  %s2395_s21 = smov [#allocation7]   ;;  %s2231_s25 = scalar_lea.hbm %s3014_s1, 256 }
   0x5   :  { %s34_s22 = sshll.u32 %s2395_s21, 4  ;;  %p2232_p0 = scmp.ne.s32.totalorder %s3014_s1, %s2231_s25  ;;  %s35_s22 = int_to_ptr.vmem [resolvable:$true] %s34_s22 }
   0x6   :  { %p2235_p1 = scmp.lt.u32.totalorder %s2231_s25, %s3014_s1 }
   0x8   :  { %p2237_p2 = pnand %p2235_p1, %p2232_p0 }
   0xa   :  { %2240 = shalt.err (!%p2237_p2)
}
   0xb   :  { %s2241_s30 = scalar_lea.vmem %s35_s22, 256  ;;  %p2246_p4 = scmp.lt.s32.totalorder %s35_s22, %s35_s22 }
   0xc   :  { %p2242_p3 = scmp.ne.s32.totalorder %s35_s22, %s2241_s30  ;;  %p2247_p5 = scmp.lt.s32.totalorder %s2241_s30, %s2241_s30 }
   0xe   :  { %p2248_p6 = por %p2247_p5, %p2246_p4 }
  0x10   :  { %p2249_p7 = pnand %p2248_p6, %p2242_p3 }
  0x12   :  { %2252 = shalt.err (!%p2249_p7)
}
  0x13   :  { %s2396_s7 = smov 64   ;;  %s2397_s8 = smov 4  }
  0x14   :  { %40 = dma.hbm_to_vmem [thread:$0]  %s3014_s1, 256, %s35_s22, [#allocation8], %s2396_s7, %s2396_s7, %s2397_s8  }
  0x15   :  { %s2398_s11 = smov [#allocation10]   ;;  %s2399_s13 = smov [#allocation4]  }
  0x16   :  { %s58_s12 = sshll.u32 %s2398_s11, 4  ;;  %s22_s14 = sshll.u32 %s2399_s13, 4  ;;  %s59_s12 = int_to_ptr.vmem [resolvable:$true] %s58_s12  ;;  %s23_s14 = int_to_ptr.vmem [resolvable:$true] %s22_s14 }
  0x17   :  { %s2253_s17 = scalar_lea.hbm %s3016_s3, 2048 }
  0x18   :  { %p2254_p8 = scmp.ne.s32.totalorder %s3016_s3, %s2253_s17  ;;  %p2257_p9 = scmp.lt.u32.totalorder %s2253_s17, %s3016_s3 }
  0x1a   :  { %p2259_p10 = pnand %p2257_p9, %p2254_p8 }
  0x1c   :  { %2262 = shalt.err (!%p2259_p10)
}
  0x1d   :  { %s2263_s1 = scalar_lea.vmem %s59_s12, 2048  ;;  %p2268_p12 = scmp.lt.s32.totalorder %s59_s12, %s59_s12 }
  0x1e   :  { %p2264_p11 = scmp.ne.s32.totalorder %s59_s12, %s2263_s1  ;;  %p2269_p13 = scmp.lt.s32.totalorder %s2263_s1, %s2263_s1 }
  0x20   :  { %p2270_p0 = por %p2269_p13, %p2268_p12 }
  0x22   :  { %p2271_p1 = pnand %p2270_p0, %p2264_p11 }
  0x24   :  { %2274 = shalt.err (!%p2271_p1)
}
  0x25   :  { %64 = dma.hbm_to_vmem [thread:$0]  %s3016_s3, 2048, %s59_s12, [#allocation11], %s2396_s7, %s2396_s7, %s2397_s8  }
  0x26   :  { %s2275_s26 = scalar_lea.hbm %s3013_s0, 1024 }
  0x27   :  { %p2276_p2 = scmp.ne.s32.totalorder %s3013_s0, %s2275_s26  ;;  %p2279_p3 = scmp.lt.u32.totalorder %s2275_s26, %s3013_s0 }
  0x29   :  { %p2281_p4 = pnand %p2279_p3, %p2276_p2 }
  0x2b   :  { %2284 = shalt.err (!%p2281_p4)
}
  0x2c   :  { %s2285_s9 = scalar_lea.vmem %s23_s14, 1024  ;;  %p2290_p6 = scmp.lt.s32.totalorder %s23_s14, %s23_s14 }
  0x2d   :  { %p2286_p5 = scmp.ne.s32.totalorder %s23_s14, %s2285_s9  ;;  %p2291_p7 = scmp.lt.s32.totalorder %s2285_s9, %s2285_s9 }
  0x2f   :  { %p2292_p8 = por %p2291_p7, %p2290_p6 }
  0x31   :  { %p2293_p9 = pnand %p2292_p8, %p2286_p5 }
  0x33   :  { %2296 = shalt.err (!%p2293_p9)
}
  0x34   :  { %s2400_s3 = smov 128   ;;  %s2401_s10 = smov 8  }
  0x35   :  { %28 = dma.hbm_to_vmem [thread:$0]  %s3013_s0, 1024, %s23_s14, [#allocation5], %s2400_s3, %s2400_s3, %s2401_s10  }
  0x36   :  { %s2402_s13 = smov [#allocation9]   ;;  %s2403_s16 = smov [#allocation12]  }
  0x37   :  { %s46_s15 = sshll.u32 %s2402_s13, 4  ;;  %s70_s17 = sshll.u32 %s2403_s16, 4  ;;  %s47_s15 = int_to_ptr.vmem [resolvable:$true] %s46_s15  ;;  %s71_s17 = int_to_ptr.vmem [resolvable:$true] %s70_s17 }
  0x38   :  { %s2297_s20 = scalar_lea.hbm %s3015_s2, 256 }
  0x39   :  { %p2298_p10 = scmp.ne.s32.totalorder %s3015_s2, %s2297_s20  ;;  %p2301_p11 = scmp.lt.u32.totalorder %s2297_s20, %s3015_s2 }
  0x3b   :  { %p2303_p12 = pnand %p2301_p11, %p2298_p10 }
  0x3d   :  { %2306 = shalt.err (!%p2303_p12)
}
  0x3e   :  { %s2307_s0 = scalar_lea.vmem %s47_s15, 256  ;;  %p2312_p0 = scmp.lt.s32.totalorder %s47_s15, %s47_s15 }
  0x3f   :  { %p2308_p13 = scmp.ne.s32.totalorder %s47_s15, %s2307_s0  ;;  %p2313_p1 = scmp.lt.s32.totalorder %s2307_s0, %s2307_s0 }
  0x41   :  { %p2314_p2 = por %p2313_p1, %p2312_p0 }
  0x43   :  { %p2315_p3 = pnand %p2314_p2, %p2308_p13 }
  0x45   :  { %2318 = shalt.err (!%p2315_p3)
}
  0x46   :  { %52 = dma.hbm_to_vmem [thread:$0]  %s3015_s2, 256, %s47_s15, [#allocation8], %s2396_s7, %s2396_s7, %s2397_s8  }
  0x47   :  { %s2319_s27 = scalar_lea.hbm %s3017_s4, 32 }
  0x48   :  { %p2320_p4 = scmp.ne.s32.totalorder %s3017_s4, %s2319_s27  ;;  %p2323_p5 = scmp.lt.u32.totalorder %s2319_s27, %s3017_s4 }
  0x4a   :  { %p2325_p6 = pnand %p2323_p5, %p2320_p4 }
  0x4c   :  { %2328 = shalt.err (!%p2325_p6)
}
  0x4d   :  { %s2329_s11 = scalar_lea.vmem %s71_s17, 32  ;;  %p2334_p8 = scmp.lt.s32.totalorder %s71_s17, %s71_s17 }
  0x4e   :  { %p2330_p7 = scmp.ne.s32.totalorder %s71_s17, %s2329_s11  ;;  %p2335_p9 = scmp.lt.s32.totalorder %s2329_s11, %s2329_s11 }
  0x50   :  { %p2336_p10 = por %p2335_p9, %p2334_p8 }
  0x52   :  { %p2337_p11 = pnand %p2336_p10, %p2330_p7 }
  0x54   :  { %2340 = shalt.err (!%p2337_p11)
}
  0x55   :  { %s2404_s2 = smov 16   ;;  %s2405_s8 = smov 1  }
  0x56   :  { %76 = dma.hbm_to_vmem [thread:$0]  %s3017_s4, 32, %s71_s17, [#allocation11], %s2404_s2, %s2404_s2, %s2405_s8  }
  0x57   :  { %2385 = dma.done.wait [#allocation5], 1024  }
  0x58   :  { %2386 = vsyncadd [#allocation5], 4294966272 }
  0x59   :  { %2387 = dma.done.wait [#allocation8], 512  }
  0x5a   :  { %2388 = vsyncadd [#allocation8], 4294966784 }
  0x5b   :  { %2389 = dma.done.wait [#allocation11], 2080  }
  0x5c   :  { %2390 = vsyncadd [#allocation11], 4294965216  ;;  %v2406_v0 = vmov 0.0   ;;  %vm2407_vm0 = vmmov 0   ;;  %v2523_v1 = vld [vmem:[#allocation10] sm:$0xff]   ;;  %v2526_v2 = vld [vmem:[#allocation10 + $0x8] sm:$0xff]  }
  0x5d   :  { %1733 = vmatprep.subr.bf16.mxu1 %v2406_v0  ;;  %1749 = vmatprep.mubr.msk.bf16.mxu1 %vm2407_vm0, %v2406_v0  ;;  %v2088_v3 = vld [vmem:[#allocation7] sm:$0xff]   ;;  %v2530_v4 = vld [vmem:[#allocation10 + $0x10] sm:$0xff]   ;;  %v2090_v5 = vld [vmem:[#allocation7 + $0x8] sm:$0xff]   ;;  %vm146_vm1 = vcmask 261120   ;;  %v2408_v17 = vmov 0   ;;  %s2409_s4 = smov 32  }
  0x5e   :  { %1734 = vmatpush3.bf16.msra.mxu1 %v2523_v1  ;;  %1721 = vmatprep.subr.bf16.mxu0 %v2088_v3  ;;  %v116_v6 = vld [vmem:[#allocation4] sm:$0xff]  ;;  %v117_v7 = vld [vmem:[#allocation4 + $0x8] sm:$0xff]  ;;  %v2533_v8 = vld [vmem:[#allocation10 + $0x18] sm:$0xff]   ;;  %s2410_s15 = smov 96   ;;  %s2411_s16 = smov [#allocation14]  }
  0x5f   :  { %1735 = vmatprep.subr.bf16.mxu1 %v2406_v0  ;;  %1722 = vmatpush3.bf16.msra.mxu0 %v2088_v3  ;;  %v124_v9 = vpack.c.bf16 %v117_v7, %v116_v6  ;;  %v118_v10 = vld [vmem:[#allocation4 + $0x10] sm:$0xff]  ;;  %v119_v11 = vld [vmem:[#allocation4 + $0x18] sm:$0xff]  ;;  %v2538_v13 = vld [vmem:[#allocation10 + $0x20] sm:$0xff]   ;;  %s1494_s17 = sshll.u32 %s2411_s16, 4  ;;  %s1495_s17 = int_to_ptr.vmem [resolvable:$true] %s1494_s17 }
  0x60   :  { %1723 = vmatprep.subr.bf16.mxu0 %v2090_v5  ;;  %v125_v12 = vpack.c.bf16 %v119_v11, %v118_v10  ;;  %v2547_v14 = vld [vmem:[#allocation10 + $0x28] sm:$0xff]   ;;  %v2553_v15 = vld [vmem:[#allocation10 + $0x30] sm:$0xff]   ;;  %v2559_v16 = vld [vmem:[#allocation10 + $0x38] sm:$0xff]   ;;  %p2346_p13 = scmp.lt.s32.totalorder %s1495_s17, %s1495_s17 }
  0x61   :  { %1725 = vmatprep.mubr.msk.bf16.mxu0 %vm146_vm1, %v124_v9  ;;  %v2599_v22 = vld [vmem:[#allocation12] ss:$0 sm:$0xff]  ;;  %v121_v33 = vld [vmem:[#allocation4 + $0x28] sm:$0xff]  ;;  %v122_v34 = vld [vmem:[#allocation4 + $0x30] sm:$0xff] }
  0x62   :  { %1736 = vmatpush3.bf16.msra.mxu1 %v2526_v2  ;;  %v120_v32 = vld [vmem:[#allocation4 + $0x20] sm:$0xff]  ;;  %v123_v36 = vld [vmem:[#allocation4 + $0x38] sm:$0xff] }
  0x63   :  { %1737 = vmatprep.subr.bf16.mxu1 %v2406_v0  ;;  %1724 = vmatpush3.bf16.msra.mxu0 %v2090_v5  ;;  %v126_v35 = vpack.c.bf16 %v121_v33, %v120_v32  ;;  %v127_v37 = vpack.c.bf16 %v123_v36, %v122_v34 }
  0x64   :  { %1753 = vmatprep.subr.bf16.mxu0 %v2406_v0 }
  0x66   :  { %1738 = vmatpush3.bf16.msra.mxu1 %v2530_v4  ;;  %1726 = vmatmul.mubr.msk.bf16.vlgmr.msra.gmra.mrb[0].mxu0 %vm146_vm1, %v125_v12 }
  0x67   :  { %1739 = vmatprep.subr.bf16.mxu1 %v2406_v0  ;;  %1754 = vmatpush3.bf16.msra.mxu0 %v2523_v1 }
  0x68   :  { %1755 = vmatprep.subr.bf16.mxu0 %v2406_v0  ;;  %1729 = vmatprep.mubr.msk.bf16.mxu0 %vm146_vm1, %v126_v35 }
  0x6a   :  { %1740 = vmatpush3.bf16.msra.mxu1 %v2533_v8 }
  0x6b   :  { %1741 = vmatprep.subr.bf16.mxu1 %v2406_v0  ;;  %1756 = vmatpush3.bf16.msra.mxu0 %v2526_v2 }
  0x6c   :  { %1757 = vmatprep.subr.bf16.mxu0 %v2406_v0 }
  0x6e   :  { %1742 = vmatpush3.bf16.msra.mxu1 %v2538_v13  ;;  %1730 = vmatmul.mubr.msk.bf16.gmra.mrb[4].mxu0 %vm146_vm1, %v127_v37 }
  0x6f   :  { %1743 = vmatprep.subr.bf16.mxu1 %v2406_v0  ;;  %1758 = vmatpush3.bf16.msra.mxu0 %v2530_v4 }
  0x70   :  { %1759 = vmatprep.subr.bf16.mxu0 %v2406_v0  ;;  %1769 = vmatprep.mubr.msk.bf16.mxu0 %vm2407_vm0, %v2406_v0 }
  0x72   :  { %1744 = vmatpush3.bf16.msra.mxu1 %v2547_v14 }
  0x73   :  { %1745 = vmatprep.subr.bf16.mxu1 %v2406_v0  ;;  %1760 = vmatpush3.bf16.msra.mxu0 %v2533_v8 }
  0x74   :  { %1761 = vmatprep.subr.bf16.mxu0 %v2406_v0 }
  0x76   :  { %1746 = vmatpush3.bf16.msra.mxu1 %v2553_v15 }
  0x77   :  { %1747 = vmatprep.subr.bf16.mxu1 %v2406_v0  ;;  %1762 = vmatpush3.bf16.msra.mxu0 %v2538_v13 }
  0x78   :  { %1763 = vmatprep.subr.bf16.mxu0 %v2406_v0 }
  0x7a   :  { %1748 = vmatpush3.bf16.msra.mxu1 %v2559_v16 }
  0x7b   :  { %1773 = vmatprep.subr.bf16.mxu1 %v2406_v0  ;;  %1764 = vmatpush3.bf16.msra.mxu0 %v2547_v14 }
  0x7c   :  { %1765 = vmatprep.subr.bf16.mxu0 %v2406_v0 }
  0x7d   :  { %1750 = vmatmul.mubr.bf16.vlgmr.msra.gmra.mrb[0].mxu1 %v2408_v17 }
  0x7e   :  { %1774 = vmatpush3.bf16.msra.mxu1 %v2523_v1  ;;  %1789 = vmatprep.mubr.msk.bf16.mxu1 %vm2407_vm0, %v2406_v0 }
  0x7f   :  { %1775 = vmatprep.subr.bf16.mxu1 %v2406_v0  ;;  %1766 = vmatpush3.bf16.msra.mxu0 %v2553_v15 }
  0x80   :  { %1767 = vmatprep.subr.bf16.mxu0 %v2406_v0 }
  0x82   :  { %1776 = vmatpush3.bf16.msra.mxu1 %v2526_v2 }
  0x83   :  { %1777 = vmatprep.subr.bf16.mxu1 %v2406_v0  ;;  %1768 = vmatpush3.bf16.msra.mxu0 %v2559_v16 }
  0x84   :  { %1793 = vmatprep.subr.bf16.mxu0 %v2406_v0 }
  0x86   :  { %1778 = vmatpush3.bf16.msra.mxu1 %v2530_v4 }
  0x87   :  { %1779 = vmatprep.subr.bf16.mxu1 %v2406_v0 }
  0x8a   :  { %1780 = vmatpush3.bf16.msra.mxu1 %v2533_v8 }
  0x8b   :  { %1781 = vmatprep.subr.bf16.mxu1 %v2406_v0 }
  0x8e   :  { %1782 = vmatpush3.bf16.msra.mxu1 %v2538_v13 }
  0x8f   :  { %1783 = vmatprep.subr.bf16.mxu1 %v2406_v0 }
  0x92   :  { %1784 = vmatpush3.bf16.msra.mxu1 %v2547_v14 }
  0x93   :  { %1785 = vmatprep.subr.bf16.mxu1 %v2406_v0 }
  0x96   :  { %1786 = vmatpush3.bf16.msra.mxu1 %v2553_v15 }
  0x97   :  { %1787 = vmatprep.subr.bf16.mxu1 %v2406_v0 }
  0x9a   :  { %1788 = vmatpush3.bf16.msra.mxu1 %v2559_v16 }
  0x9b   :  { %1813 = vmatprep.subr.bf16.mxu1 %v2406_v0 }
 0x139   :  { %v2593_v18 = vpop.f32.mrb[0].mxu0 }
 0x13a   :  { %v193_v19 = vpop.f32.mrb[1].mxu0 }
 0x13b   :  { %v2595_v20 = vpop.f32.mrb[2].mxu0  ;;  %v194_v23 = vadd.f32 %v2599_v22, %v193_v19 }
 0x13c   :  { %v2597_v21 = vpop.f32.mrb[3].mxu0 }
 0x13d   :  { %v197_v53 = vadd.f32 %v2599_v22, %v2597_v21  ;;  %v202_v21 = vadd.f32 %v2593_v18, %v2599_v22 }
 0x141   :  { %v2628_v49 = vpop.f32.mrb[4].mxu0 }
 0x142   :  { %v2630_v50 = vpop.f32.mrb[5].mxu0 }
 0x143   :  { %v2632_v51 = vpop.f32.mrb[6].mxu0 }
 0x144   :  { %v2634_v52 = vpop.f32.mrb[7].mxu0 }
 0x150   :  { %v315_v24 = vpop.f32.mrb[0].mxu1 }
 0x151   :  { %v321_v25 = vadd.f32 %v315_v24, %v194_v23  ;;  %v1751_v26 = vpop.f32.mrb[1].mxu1 }
 0x152   :  { %v318_v27 = vpop.f32.mrb[2].mxu1 }
 0x153   :  { %v1534_v28 = vmul.f32 -1.442695, %v321_v25  ;;  %v1752_v29 = vpop.f32.mrb[3].mxu1 }
 0x155   :  { %2103 = vpow2.f32 %v1534_v28 }
 0x15f   :  { %v2104_v30 = vpop.eup %2103 }
 0x160   :  { %v325_v31 = vadd.f32 1.0, %v2104_v30 }
 0x162   :  { %2105 = vrcp.f32 %v325_v31 }
 0x163   :  { %2107 = vtanh.f32 %v321_v25 }
 0x16c   :  { %v2106_v38 = vpop.eup %2105 }
 0x16d   :  { %331 = vrot.lane.b32.xlu1 %v2106_v38, %s2409_s4  ;;  %329 = vrot.lane.b32.xlu0 %v2106_v38, %s2410_s15  ;;  %v2108_v39 = vpop.eup %2107 }
 0x171   :  { %333 = vrot.lane.b32.xlu0 %v2108_v39, %s2396_s7 }
 0x1df   :  { %v330_v40 = vpop.permute.xlu0 %329  ;;  %v332_v46 = vpop.permute.xlu1 %331 }
 0x1e0   :  { %v335_v42 = vmul.f32 0.0, %v330_v40 }
 0x1e3   :  { %v334_v41 = vpop.permute.xlu0 %333 }
 0x1e4   :  { %v336_v43 = vmul.f32 %v2106_v38, %v334_v41  ;;  %v205_v41 = vadd.f32 %v2595_v20, %v2599_v22 }
 0x1e6   :  { %v337_v44 = vadd.f32 %v336_v43, %v335_v42 }
 0x1e8   :  { %2109 = vtanh.f32 %v337_v44 }
 0x1f2   :  { %v2110_v45 = vpop.eup %2109 }
 0x1f3   :  { %v339_v47 = vmul.f32 %v2110_v45, %v332_v46 }
 0x1f5   :  { %342 = vst.msk [vmem:[#allocation2] sm:$0xff] %vm146_vm1, %v339_v47  ;;  %v345_v48 = vpack.c.bf16 %v339_v47, %v339_v47 }
 0x1f7   :  { %1770 = vmatmul.mubr.bf16.vlgmr.msra.gmra.mrb[8].mxu0 %v345_v48 }
 0x1f8   :  { %1794 = vmatpush3.bf16.msra.mxu0 %v2523_v1  ;;  %1809 = vmatprep.mubr.msk.bf16.mxu0 %vm2407_vm0, %v2406_v0 }
 0x1f9   :  { %1795 = vmatprep.subr.bf16.mxu0 %v2406_v0 }
 0x1fc   :  { %1796 = vmatpush3.bf16.msra.mxu0 %v2526_v2 }
 0x1fd   :  { %1797 = vmatprep.subr.bf16.mxu0 %v2406_v0 }
 0x200   :  { %1798 = vmatpush3.bf16.msra.mxu0 %v2530_v4 }
 0x201   :  { %1799 = vmatprep.subr.bf16.mxu0 %v2406_v0 }
 0x204   :  { %1800 = vmatpush3.bf16.msra.mxu0 %v2533_v8 }
 0x205   :  { %1801 = vmatprep.subr.bf16.mxu0 %v2406_v0 }
 0x208   :  { %1802 = vmatpush3.bf16.msra.mxu0 %v2538_v13 }
 0x209   :  { %1803 = vmatprep.subr.bf16.mxu0 %v2406_v0 }
 0x20c   :  { %1804 = vmatpush3.bf16.msra.mxu0 %v2547_v14 }
 0x20d   :  { %1805 = vmatprep.subr.bf16.mxu0 %v2406_v0 }
 0x210   :  { %1806 = vmatpush3.bf16.msra.mxu0 %v2553_v15 }
 0x211   :  { %1807 = vmatprep.subr.bf16.mxu0 %v2406_v0 }
 0x214   :  { %1808 = vmatpush3.bf16.msra.mxu0 %v2559_v16 }
 0x215   :  { %1833 = vmatprep.subr.bf16.mxu0 %v2406_v0 }
 0x2ca   :  { %v380_v54 = vpop.f32.mrb[8].mxu0 }
 0x2cb   :  { %v386_v55 = vadd.f32 %v380_v54, %v197_v53  ;;  %v1771_v56 = vpop.f32.mrb[9].mxu0 }
 0x2cc   :  { %v383_v57 = vpop.f32.mrb[10].mxu0 }
 0x2cd   :  { %v1535_v58 = vmul.f32 -1.442695, %v386_v55  ;;  %2111 = vtanh.f32 %v386_v55  ;;  %v1772_v59 = vpop.f32.mrb[11].mxu0 }
 0x2cf   :  { %2113 = vpow2.f32 %v1535_v58 }
 0x2d7   :  { %v2112_v60 = vpop.eup %2111 }
 0x2d8   :  { %398 = vrot.lane.b32.xlu0 %v2112_v60, %s2396_s7 }
 0x2d9   :  { %v2114_v61 = vpop.eup %2113 }
 0x2da   :  { %v390_v62 = vadd.f32 1.0, %v2114_v61 }
 0x2dc   :  { %2115 = vrcp.f32 %v390_v62 }
 0x2e6   :  { %v2116_v63 = vpop.eup %2115 }
 0x2e7   :  { %394 = vrot.lane.b32.xlu1 %v2116_v63, %s2410_s15 }
 0x2eb   :  { %396 = vrot.lane.b32.xlu1 %v2116_v63, %s2409_s4 }
 0x34a   :  { %v399_v3 = vpop.permute.xlu0 %398 }
 0x34b   :  { %v401_v6 = vmul.f32 %v2116_v63, %v399_v3  ;;  %v210_v3 = vadd.f32 %v2599_v22, %v2630_v50 }
 0x359   :  { %v395_v5 = vpop.permute.xlu1 %394 }
 0x35a   :  { %v400_v7 = vmul.f32 %v395_v5, %v337_v44 }
 0x35c   :  { %v402_v9 = vadd.f32 %v401_v6, %v400_v7 }
 0x35d   :  { %v397_v11 = vpop.permute.xlu1 %396 }
 0x35e   :  { %2117 = vtanh.f32 %v402_v9 }
 0x368   :  { %v2118_v10 = vpop.eup %2117 }
 0x369   :  { %v404_v12 = vmul.f32 %v2118_v10, %v397_v11 }
 0x36b   :  { %407 = vst.msk [vmem:[#allocation2 + $0x8] sm:$0xff] %vm146_vm1, %v404_v12  ;;  %v410_v19 = vpack.c.bf16 %v404_v12, %v404_v12 }
 0x36d   :  { %1790 = vmatmul.mubr.bf16.vlgmr.msra.gmra.mrb[4].mxu1 %v410_v19 }
 0x36e   :  { %1814 = vmatpush3.bf16.msra.mxu1 %v2523_v1  ;;  %1829 = vmatprep.mubr.msk.bf16.mxu1 %vm2407_vm0, %v2406_v0 }
 0x36f   :  { %1815 = vmatprep.subr.bf16.mxu1 %v2406_v0 }
 0x372   :  { %1816 = vmatpush3.bf16.msra.mxu1 %v2526_v2 }
 0x373   :  { %1817 = vmatprep.subr.bf16.mxu1 %v2406_v0 }
 0x376   :  { %1818 = vmatpush3.bf16.msra.mxu1 %v2530_v4 }
 0x377   :  { %1819 = vmatprep.subr.bf16.mxu1 %v2406_v0 }
 0x37a   :  { %1820 = vmatpush3.bf16.msra.mxu1 %v2533_v8 }
 0x37b   :  { %1821 = vmatprep.subr.bf16.mxu1 %v2406_v0 }
 0x37e   :  { %1822 = vmatpush3.bf16.msra.mxu1 %v2538_v13 }
 0x37f   :  { %1823 = vmatprep.subr.bf16.mxu1 %v2406_v0 }
 0x382   :  { %1824 = vmatpush3.bf16.msra.mxu1 %v2547_v14 }
 0x383   :  { %1825 = vmatprep.subr.bf16.mxu1 %v2406_v0 }
 0x386   :  { %1826 = vmatpush3.bf16.msra.mxu1 %v2553_v15 }
 0x387   :  { %1827 = vmatprep.subr.bf16.mxu1 %v2406_v0 }
 0x38a   :  { %1828 = vmatpush3.bf16.msra.mxu1 %v2559_v16 }
 0x38b   :  { %1853 = vmatprep.subr.bf16.mxu1 %v2406_v0 }
 0x440   :  { %v445_v23 = vpop.f32.mrb[4].mxu1 }
 0x441   :  { %v451_v24 = vadd.f32 %v445_v23, %v202_v21  ;;  %v1791_v25 = vpop.f32.mrb[5].mxu1 }
 0x442   :  { %v448_v26 = vpop.f32.mrb[6].mxu1 }
 0x443   :  { %v1536_v27 = vmul.f32 -1.442695, %v451_v24  ;;  %2119 = vtanh.f32 %v451_v24  ;;  %v1792_v28 = vpop.f32.mrb[7].mxu1 }
 0x445   :  { %2121 = vpow2.f32 %v1536_v27 }
 0x44d   :  { %v2120_v29 = vpop.eup %2119 }
 0x44e   :  { %463 = vrot.lane.b32.xlu1 %v2120_v29, %s2396_s7 }
 0x44f   :  { %v2122_v30 = vpop.eup %2121 }
 0x450   :  { %v455_v31 = vadd.f32 1.0, %v2122_v30 }
 0x452   :  { %2123 = vrcp.f32 %v455_v31 }
 0x45c   :  { %v2124_v32 = vpop.eup %2123 }
 0x45d   :  { %459 = vrot.lane.b32.xlu0 %v2124_v32, %s2410_s15 }
 0x461   :  { %461 = vrot.lane.b32.xlu0 %v2124_v32, %s2409_s4 }
 0x4c0   :  { %v464_v18 = vpop.permute.xlu1 %463 }
 0x4c1   :  { %v466_v34 = vmul.f32 %v2124_v32, %v464_v18 }
 0x4cf   :  { %v460_v33 = vpop.permute.xlu0 %459 }
 0x4d0   :  { %v465_v35 = vmul.f32 %v460_v33, %v402_v9 }
 0x4d2   :  { %v467_v36 = vadd.f32 %v466_v34, %v465_v35 }
 0x4d3   :  { %v462_v38 = vpop.permute.xlu0 %461 }
 0x4d4   :  { %2125 = vtanh.f32 %v467_v36 }
 0x4de   :  { %v2126_v37 = vpop.eup %2125 }
 0x4df   :  { %v469_v39 = vmul.f32 %v2126_v37, %v462_v38 }
 0x4e1   :  { %472 = vst.msk [vmem:[#allocation2 + $0x10] sm:$0xff] %vm146_vm1, %v469_v39  ;;  %v475_v40 = vpack.c.bf16 %v469_v39, %v469_v39 }
 0x4e3   :  { %1810 = vmatmul.mubr.bf16.vlgmr.msra.gmra.mrb[12].mxu0 %v475_v40 }
 0x4e4   :  { %1834 = vmatpush3.bf16.msra.mxu0 %v2523_v1  ;;  %1849 = vmatprep.mubr.msk.bf16.mxu0 %vm2407_vm0, %v2406_v0 }
 0x4e5   :  { %1835 = vmatprep.subr.bf16.mxu0 %v2406_v0 }
 0x4e8   :  { %1836 = vmatpush3.bf16.msra.mxu0 %v2526_v2 }
 0x4e9   :  { %1837 = vmatprep.subr.bf16.mxu0 %v2406_v0 }
 0x4ec   :  { %1838 = vmatpush3.bf16.msra.mxu0 %v2530_v4 }
 0x4ed   :  { %1839 = vmatprep.subr.bf16.mxu0 %v2406_v0 }
 0x4f0   :  { %1840 = vmatpush3.bf16.msra.mxu0 %v2533_v8 }
 0x4f1   :  { %1841 = vmatprep.subr.bf16.mxu0 %v2406_v0 }
 0x4f4   :  { %1842 = vmatpush3.bf16.msra.mxu0 %v2538_v13 }
 0x4f5   :  { %1843 = vmatprep.subr.bf16.mxu0 %v2406_v0 }
 0x4f8   :  { %1844 = vmatpush3.bf16.msra.mxu0 %v2547_v14 }
 0x4f9   :  { %1845 = vmatprep.subr.bf16.mxu0 %v2406_v0 }
 0x4fc   :  { %1846 = vmatpush3.bf16.msra.mxu0 %v2553_v15 }
 0x4fd   :  { %1847 = vmatprep.subr.bf16.mxu0 %v2406_v0 }
 0x500   :  { %1848 = vmatpush3.bf16.msra.mxu0 %v2559_v16 }
 0x501   :  { %1873 = vmatprep.subr.bf16.mxu0 %v2406_v0 }
 0x5b6   :  { %v510_v42 = vpop.f32.mrb[12].mxu0 }
 0x5b7   :  { %v516_v43 = vadd.f32 %v510_v42, %v205_v41  ;;  %v1811_v44 = vpop.f32.mrb[13].mxu0  ;;  %v824_v42 = vld [vmem:[#allocation2 + $0x8] sm:$0xff] }
 0x5b8   :  { %v513_v45 = vpop.f32.mrb[14].mxu0  ;;  %v823_v44 = vld [vmem:[#allocation2] sm:$0xff] }
 0x5b9   :  { %v1537_v46 = vmul.f32 -1.442695, %v516_v43  ;;  %2127 = vtanh.f32 %v516_v43  ;;  %v1812_v47 = vpop.f32.mrb[15].mxu0  ;;  %v2094_v45 = vld [vmem:[#allocation9 + $0x8] sm:$0xff]  }
 0x5bb   :  { %2129 = vpow2.f32 %v1537_v46  ;;  %v831_v46 = vpack.c.bf16 %v824_v42, %v823_v44 }
 0x5c3   :  { %v2128_v48 = vpop.eup %2127 }
 0x5c4   :  { %528 = vrot.lane.b32.xlu0 %v2128_v48, %s2396_s7  ;;  %v825_v48 = vld [vmem:[#allocation2 + $0x10] sm:$0xff] }
 0x5c5   :  { %v2130_v53 = vpop.eup %2129 }
 0x5c6   :  { %v520_v54 = vadd.f32 1.0, %v2130_v53 }
 0x5c8   :  { %2131 = vrcp.f32 %v520_v54 }
 0x5d2   :  { %v2132_v55 = vpop.eup %2131 }
 0x5d3   :  { %524 = vrot.lane.b32.xlu1 %v2132_v55, %s2410_s15 }
 0x5d7   :  { %526 = vrot.lane.b32.xlu1 %v2132_v55, %s2409_s4 }
 0x636   :  { %v529_v20 = vpop.permute.xlu0 %528 }
 0x637   :  { %v531_v57 = vmul.f32 %v2132_v55, %v529_v20 }
 0x645   :  { %v525_v56 = vpop.permute.xlu1 %524 }
 0x646   :  { %v530_v58 = vmul.f32 %v525_v56, %v467_v36  ;;  %v218_v56 = vadd.f32 %v2628_v49, %v2599_v22 }
 0x648   :  { %v532_v59 = vadd.f32 %v531_v57, %v530_v58 }
 0x649   :  { %v527_v61 = vpop.permute.xlu1 %526 }
 0x64a   :  { %2133 = vtanh.f32 %v532_v59 }
 0x654   :  { %v2134_v60 = vpop.eup %2133 }
 0x655   :  { %v534_v62 = vmul.f32 %v2134_v60, %v527_v61 }
 0x657   :  { %537 = vst.msk [vmem:[#allocation2 + $0x18] sm:$0xff] %vm146_vm1, %v534_v62  ;;  %v540_v63 = vpack.c.bf16 %v534_v62, %v534_v62 }
 0x659   :  { %1830 = vmatmul.mubr.bf16.vlgmr.msra.gmra.mrb[8].mxu1 %v540_v63 }
 0x65a   :  { %1854 = vmatpush3.bf16.msra.mxu1 %v2523_v1  ;;  %1869 = vmatprep.mubr.msk.bf16.mxu1 %vm2407_vm0, %v2406_v0 }
 0x65b   :  { %1855 = vmatprep.subr.bf16.mxu1 %v2406_v0 }
 0x65e   :  { %1856 = vmatpush3.bf16.msra.mxu1 %v2526_v2  ;;  %v826_v47 = vld [vmem:[#allocation2 + $0x18] sm:$0xff] }
 0x65f   :  { %1857 = vmatprep.subr.bf16.mxu1 %v2406_v0  ;;  %v832_v55 = vpack.c.bf16 %v826_v47, %v825_v48 }
 0x662   :  { %1858 = vmatpush3.bf16.msra.mxu1 %v2530_v4 }
 0x663   :  { %1859 = vmatprep.subr.bf16.mxu1 %v2406_v0 }
 0x666   :  { %1860 = vmatpush3.bf16.msra.mxu1 %v2533_v8 }
 0x667   :  { %1861 = vmatprep.subr.bf16.mxu1 %v2406_v0 }
 0x66a   :  { %1862 = vmatpush3.bf16.msra.mxu1 %v2538_v13 }
 0x66b   :  { %1863 = vmatprep.subr.bf16.mxu1 %v2406_v0 }
 0x66e   :  { %1864 = vmatpush3.bf16.msra.mxu1 %v2547_v14 }
 0x66f   :  { %1865 = vmatprep.subr.bf16.mxu1 %v2406_v0 }
 0x672   :  { %1866 = vmatpush3.bf16.msra.mxu1 %v2553_v15 }
 0x673   :  { %1867 = vmatprep.subr.bf16.mxu1 %v2406_v0 }
 0x676   :  { %1868 = vmatpush3.bf16.msra.mxu1 %v2559_v16 }
 0x72c   :  { %v575_v5 = vpop.f32.mrb[8].mxu1 }
 0x72d   :  { %v581_v6 = vadd.f32 %v575_v5, %v210_v3  ;;  %v1831_v7 = vpop.f32.mrb[9].mxu1 }
 0x72e   :  { %v578_v9 = vpop.f32.mrb[10].mxu1 }
 0x72f   :  { %v1538_v10 = vmul.f32 -1.442695, %v581_v6  ;;  %2135 = vtanh.f32 %v581_v6  ;;  %v1832_v11 = vpop.f32.mrb[11].mxu1 }
 0x730   :  { %v2757_v11 = vld [vmem:[#allocation10 + $0x40] sm:$0xff]  }
 0x731   :  { %2137 = vpow2.f32 %v1538_v10 }
 0x739   :  { %v2136_v12 = vpop.eup %2135 }
 0x73a   :  { %593 = vrot.lane.b32.xlu1 %v2136_v12, %s2396_s7  ;;  %v2761_v12 = vld [vmem:[#allocation10 + $0x48] sm:$0xff]  }
 0x73b   :  { %v2138_v19 = vpop.eup %2137 }
 0x73c   :  { %v585_v21 = vadd.f32 1.0, %v2138_v19  ;;  %v2765_v19 = vld [vmem:[#allocation10 + $0x50] sm:$0xff]  }
 0x73e   :  { %2139 = vrcp.f32 %v585_v21  ;;  %v2769_v21 = vld [vmem:[#allocation10 + $0x58] sm:$0xff]  }
 0x748   :  { %v2140_v23 = vpop.eup %2139 }
 0x749   :  { %589 = vrot.lane.b32.xlu0 %v2140_v23, %s2410_s15 }
 0x74d   :  { %591 = vrot.lane.b32.xlu0 %v2140_v23, %s2409_s4 }
 0x7ac   :  { %v594_v50 = vpop.permute.xlu1 %593 }
 0x7ad   :  { %v596_v25 = vmul.f32 %v2140_v23, %v594_v50  ;;  %v2773_v23 = vld [vmem:[#allocation10 + $0x60] sm:$0xff]   ;;  %v2777_v50 = vld [vmem:[#allocation10 + $0x68] sm:$0xff]  }
 0x7bb   :  { %v590_v24 = vpop.permute.xlu0 %589 }
 0x7bc   :  { %v595_v26 = vmul.f32 %v590_v24, %v532_v59  ;;  %v2781_v24 = vld [vmem:[#allocation10 + $0x70] sm:$0xff]  }
 0x7be   :  { %v597_v27 = vadd.f32 %v596_v25, %v595_v26  ;;  %v2785_v25 = vld [vmem:[#allocation10 + $0x78] sm:$0xff]  }
 0x7bf   :  { %v592_v29 = vpop.permute.xlu0 %591 }
 0x7c0   :  { %2141 = vtanh.f32 %v597_v27 }
 0x7ca   :  { %v2142_v28 = vpop.eup %2141 }
 0x7cb   :  { %v599_v30 = vmul.f32 %v2142_v28, %v592_v29 }
 0x7cd   :  { %602 = vst.msk [vmem:[#allocation2 + $0x20] sm:$0xff] %vm146_vm1, %v599_v30  ;;  %v605_v31 = vpack.c.bf16 %v599_v30, %v599_v30 }
 0x7cf   :  { %1850 = vmatmul.mubr.bf16.vlgmr.msra.gmra.mrb[16].mxu0 %v605_v31 }
 0x7d0   :  { %1874 = vmatpush3.bf16.msra.mxu0 %v2523_v1  ;;  %1889 = vmatprep.mubr.msk.bf16.mxu0 %vm2407_vm0, %v2406_v0  ;;  %v213_v1 = vadd.f32 %v2599_v22, %v2634_v52  ;;  %v2093_v52 = vld [vmem:[#allocation9] sm:$0xff]  }
 0x7d1   :  { %1875 = vmatprep.subr.bf16.mxu0 %v2406_v0  ;;  %1893 = vmatprep.subr.bf16.mxu1 %v2093_v52 }
 0x7d4   :  { %1876 = vmatpush3.bf16.msra.mxu0 %v2526_v2  ;;  %v827_v53 = vld [vmem:[#allocation2 + $0x20] sm:$0xff] }
 0x7d5   :  { %1877 = vmatprep.subr.bf16.mxu0 %v2406_v0 }
 0x7d8   :  { %1878 = vmatpush3.bf16.msra.mxu0 %v2530_v4 }
 0x7d9   :  { %1879 = vmatprep.subr.bf16.mxu0 %v2406_v0 }
 0x7dc   :  { %1880 = vmatpush3.bf16.msra.mxu0 %v2533_v8 }
 0x7dd   :  { %1881 = vmatprep.subr.bf16.mxu0 %v2406_v0 }
 0x7e0   :  { %1882 = vmatpush3.bf16.msra.mxu0 %v2538_v13 }
 0x7e1   :  { %1883 = vmatprep.subr.bf16.mxu0 %v2406_v0 }
 0x7e4   :  { %1884 = vmatpush3.bf16.msra.mxu0 %v2547_v14 }
 0x7e5   :  { %1885 = vmatprep.subr.bf16.mxu0 %v2406_v0 }
 0x7e8   :  { %1886 = vmatpush3.bf16.msra.mxu0 %v2553_v15 }
 0x7e9   :  { %1887 = vmatprep.subr.bf16.mxu0 %v2406_v0 }
 0x7ec   :  { %1888 = vmatpush3.bf16.msra.mxu0 %v2559_v16 }
 0x7ed   :  { %1905 = vmatprep.subr.bf16.mxu0 %v2406_v0 }
 0x8a2   :  { %v640_v2 = vpop.f32.mrb[16].mxu0 }
 0x8a3   :  { %v646_v4 = vadd.f32 %v640_v2, %v213_v1  ;;  %v1851_v8 = vpop.f32.mrb[17].mxu0 }
 0x8a4   :  { %v643_v13 = vpop.f32.mrb[18].mxu0 }
 0x8a5   :  { %v1539_v32 = vmul.f32 -1.442695, %v646_v4  ;;  %2143 = vtanh.f32 %v646_v4  ;;  %v1852_v14 = vpop.f32.mrb[19].mxu0 }
 0x8a7   :  { %2145 = vpow2.f32 %v1539_v32 }
 0x8af   :  { %v2144_v18 = vpop.eup %2143 }
 0x8b0   :  { %658 = vrot.lane.b32.xlu0 %v2144_v18, %s2396_s7 }
 0x8b1   :  { %v2146_v15 = vpop.eup %2145 }
 0x8b2   :  { %v650_v33 = vadd.f32 1.0, %v2146_v15 }
 0x8b4   :  { %2147 = vrcp.f32 %v650_v33 }
 0x8be   :  { %v2148_v16 = vpop.eup %2147 }
 0x8bf   :  { %654 = vrot.lane.b32.xlu1 %v2148_v16, %s2410_s15 }
 0x8c3   :  { %656 = vrot.lane.b32.xlu1 %v2148_v16, %s2409_s4 }
 0x922   :  { %v659_v34 = vpop.permute.xlu0 %658 }
 0x923   :  { %v661_v36 = vmul.f32 %v2148_v16, %v659_v34 }
 0x931   :  { %v655_v35 = vpop.permute.xlu1 %654 }
 0x932   :  { %v660_v37 = vmul.f32 %v655_v35, %v597_v27  ;;  %v2834_v35 = vld [vmem:[#allocation12 + $0x1] ss:$0 sm:$0xff] }
 0x934   :  { %v2736_v38 = vadd.f32 %v661_v36, %v660_v37 }
 0x935   :  { %v657_v40 = vpop.permute.xlu1 %656 }
 0x936   :  { %2149 = vtanh.f32 %v2736_v38 }
 0x940   :  { %v2150_v39 = vpop.eup %2149 }
 0x941   :  { %v664_v41 = vmul.f32 %v2150_v39, %v657_v40 }
 0x943   :  { %667 = vst.msk [vmem:[#allocation2 + $0x28] sm:$0xff] %vm146_vm1, %v664_v41  ;;  %v670_v43 = vpack.c.bf16 %v664_v41, %v664_v41 }
 0x945   :  { %1870 = vmatmul.mubr.bf16.vlgmr.msra.gmra.mrb[12].mxu1 %v670_v43 }
 0x946   :  { %1894 = vmatpush3.bf16.msra.mxu1 %v2093_v52  ;;  %1897 = vmatprep.mubr.msk.bf16.mxu1 %vm146_vm1, %v831_v46 }
 0x947   :  { %1895 = vmatprep.subr.bf16.mxu1 %v2094_v45 }
 0x94a   :  { %1896 = vmatpush3.bf16.msra.mxu1 %v2094_v45  ;;  %v828_v54 = vld [vmem:[#allocation2 + $0x28] sm:$0xff] }
 0x94b   :  { %v833_v20 = vpack.c.bf16 %v828_v54, %v827_v53  ;;  %1925 = vmatprep.subr.bf16.mxu1 %v2406_v0 }
 0x94d   :  { %1898 = vmatmul.mubr.msk.bf16.vlgmr.msra.gmra.mrb[16].mxu1 %vm146_vm1, %v832_v55 }
 0x94e   :  { %1901 = vmatprep.mubr.msk.bf16.mxu1 %vm146_vm1, %v833_v20  ;;  %1926 = vmatpush3.bf16.msra.mxu1 %v2757_v11 }
 0x94f   :  { %1927 = vmatprep.subr.bf16.mxu1 %v2406_v0 }
 0x952   :  { %1928 = vmatpush3.bf16.msra.mxu1 %v2761_v12 }
 0x953   :  { %1929 = vmatprep.subr.bf16.mxu1 %v2406_v0 }
 0x956   :  { %1930 = vmatpush3.bf16.msra.mxu1 %v2765_v19 }
 0x957   :  { %1931 = vmatprep.subr.bf16.mxu1 %v2406_v0 }
 0x95a   :  { %1932 = vmatpush3.bf16.msra.mxu1 %v2769_v21 }
 0x95b   :  { %1933 = vmatprep.subr.bf16.mxu1 %v2406_v0 }
 0x95e   :  { %1934 = vmatpush3.bf16.msra.mxu1 %v2773_v23 }
 0x95f   :  { %1935 = vmatprep.subr.bf16.mxu1 %v2406_v0 }
 0x962   :  { %1936 = vmatpush3.bf16.msra.mxu1 %v2777_v50 }
 0x963   :  { %1937 = vmatprep.subr.bf16.mxu1 %v2406_v0 }
 0x966   :  { %1938 = vmatpush3.bf16.msra.mxu1 %v2781_v24 }
 0x967   :  { %1939 = vmatprep.subr.bf16.mxu1 %v2406_v0 }
 0x96a   :  { %1940 = vmatpush3.bf16.msra.mxu1 %v2785_v25 }
 0x96b   :  { %1965 = vmatprep.subr.bf16.mxu1 %v2406_v0 }
 0xa18   :  { %v705_v57 = vpop.f32.mrb[12].mxu1 }
 0xa19   :  { %v711_v58 = vadd.f32 %v705_v57, %v218_v56  ;;  %v1871_v59 = vpop.f32.mrb[13].mxu1 }
 0xa1a   :  { %v708_v60 = vpop.f32.mrb[14].mxu1 }
 0xa1b   :  { %v1540_v61 = vmul.f32 -1.442695, %v711_v58  ;;  %2151 = vtanh.f32 %v711_v58  ;;  %v1872_v62 = vpop.f32.mrb[15].mxu1 }
 0xa1d   :  { %2153 = vpow2.f32 %v1540_v61 }
 0xa20   :  { %v2746_v63 = vpop.f32.mrb[16].mxu1 }
 0xa21   :  { %v2748_v3 = vpop.f32.mrb[17].mxu1 }
 0xa22   :  { %v2750_v5 = vpop.f32.mrb[18].mxu1 }
 0xa23   :  { %v2752_v6 = vpop.f32.mrb[19].mxu1 }
 0xa25   :  { %v2152_v7 = vpop.eup %2151 }
 0xa26   :  { %723 = vrot.lane.b32.xlu1 %v2152_v7, %s2396_s7 }
 0xa27   :  { %v2154_v49 = vpop.eup %2153 }
 0xa28   :  { %v715_v9 = vadd.f32 1.0, %v2154_v49 }
 0xa2a   :  { %2155 = vrcp.f32 %v715_v9 }
 0xa34   :  { %v2156_v10 = vpop.eup %2155 }
 0xa35   :  { %719 = vrot.lane.b32.xlu0 %v2156_v10, %s2410_s15 }
 0xa39   :  { %721 = vrot.lane.b32.xlu0 %v2156_v10, %s2409_s4 }
 0xa98   :  { %v724_v26 = vpop.permute.xlu1 %723 }
 0xa99   :  { %v726_v28 = vmul.f32 %v2156_v10, %v724_v26 }
 0xaa7   :  { %v720_v27 = vpop.permute.xlu0 %719 }
 0xaa8   :  { %v725_v29 = vmul.f32 %v720_v27, %v2736_v38 }
 0xaaa   :  { %v2790_v30 = vadd.f32 %v726_v28, %v725_v29 }
 0xaab   :  { %v722_v1 = vpop.permute.xlu0 %721 }
 0xaac   :  { %2157 = vtanh.f32 %v2790_v30 }
 0xab6   :  { %v2158_v31 = vpop.eup %2157 }
 0xab7   :  { %v729_v2 = vmul.f32 %v2158_v31, %v722_v1 }
 0xab9   :  { %732 = vst.msk [vmem:[#allocation2 + $0x30] sm:$0xff] %vm146_vm1, %v729_v2  ;;  %v735_v4 = vpack.c.bf16 %v729_v2, %v729_v2 }
 0xabb   :  { %1890 = vmatmul.mubr.bf16.vlgmr.msra.gmra.mrb[20].mxu0 %v735_v4 }
 0xabc   :  { %1906 = vmatpush3.bf16.msra.mxu0 %v2757_v11  ;;  %1921 = vmatprep.mubr.msk.bf16.mxu0 %vm2407_vm0, %v2406_v0 }
 0xabd   :  { %1907 = vmatprep.subr.bf16.mxu0 %v2406_v0 }
 0xac0   :  { %1908 = vmatpush3.bf16.msra.mxu0 %v2761_v12  ;;  %v829_v56 = vld [vmem:[#allocation2 + $0x30] sm:$0xff] }
 0xac1   :  { %1909 = vmatprep.subr.bf16.mxu0 %v2406_v0 }
 0xac4   :  { %1910 = vmatpush3.bf16.msra.mxu0 %v2765_v19 }
 0xac5   :  { %1911 = vmatprep.subr.bf16.mxu0 %v2406_v0 }
 0xac8   :  { %1912 = vmatpush3.bf16.msra.mxu0 %v2769_v21 }
 0xac9   :  { %1913 = vmatprep.subr.bf16.mxu0 %v2406_v0 }
 0xacc   :  { %1914 = vmatpush3.bf16.msra.mxu0 %v2773_v23 }
 0xacd   :  { %1915 = vmatprep.subr.bf16.mxu0 %v2406_v0 }
 0xad0   :  { %1916 = vmatpush3.bf16.msra.mxu0 %v2777_v50 }
 0xad1   :  { %1917 = vmatprep.subr.bf16.mxu0 %v2406_v0 }
 0xad4   :  { %1918 = vmatpush3.bf16.msra.mxu0 %v2781_v24 }
 0xad5   :  { %1919 = vmatprep.subr.bf16.mxu0 %v2406_v0 }
 0xad8   :  { %1920 = vmatpush3.bf16.msra.mxu0 %v2785_v25 }
 0xad9   :  { %1945 = vmatprep.subr.bf16.mxu0 %v2406_v0 }
 0xadb   :  { %1922 = vmatmul.mubr.bf16.vlgmr.msra.gmra.mrb[24].mxu0 %v2408_v17  ;;  %v221_v17 = vadd.f32 %v2632_v51, %v2599_v22  ;;  %v900_v22 = vadd.f32 %v2834_v35, %v2748_v3 }
 0xadc   :  { %1946 = vmatpush3.bf16.msra.mxu0 %v2757_v11  ;;  %1961 = vmatprep.mubr.msk.bf16.mxu0 %vm2407_vm0, %v2406_v0 }
 0xadd   :  { %1947 = vmatprep.subr.bf16.mxu0 %v2406_v0 }
 0xae0   :  { %1948 = vmatpush3.bf16.msra.mxu0 %v2761_v12 }
 0xae1   :  { %1949 = vmatprep.subr.bf16.mxu0 %v2406_v0 }
 0xae4   :  { %1950 = vmatpush3.bf16.msra.mxu0 %v2765_v19 }
 0xae5   :  { %1951 = vmatprep.subr.bf16.mxu0 %v2406_v0 }
 0xae8   :  { %1952 = vmatpush3.bf16.msra.mxu0 %v2769_v21 }
 0xae9   :  { %1953 = vmatprep.subr.bf16.mxu0 %v2406_v0 }
 0xaec   :  { %1954 = vmatpush3.bf16.msra.mxu0 %v2773_v23 }
 0xaed   :  { %1955 = vmatprep.subr.bf16.mxu0 %v2406_v0 }
 0xaf0   :  { %1956 = vmatpush3.bf16.msra.mxu0 %v2777_v50 }
 0xaf1   :  { %1957 = vmatprep.subr.bf16.mxu0 %v2406_v0 }
 0xaf4   :  { %1958 = vmatpush3.bf16.msra.mxu0 %v2781_v24 }
 0xaf5   :  { %1959 = vmatprep.subr.bf16.mxu0 %v2406_v0 }
 0xaf8   :  { %1960 = vmatpush3.bf16.msra.mxu0 %v2785_v25 }
 0xaf9   :  { %1985 = vmatprep.subr.bf16.mxu0 %v2406_v0 }
 0xb8e   :  { %v770_v8 = vpop.f32.mrb[20].mxu0 }
 0xb8f   :  { %v776_v13 = vadd.f32 %v770_v8, %v221_v17  ;;  %v1891_v32 = vpop.f32.mrb[21].mxu0 }
 0xb90   :  { %v773_v14 = vpop.f32.mrb[22].mxu0 }
 0xb91   :  { %v1541_v18 = vmul.f32 -1.442695, %v776_v13  ;;  %2159 = vtanh.f32 %v776_v13  ;;  %v1892_v15 = vpop.f32.mrb[23].mxu0 }
 0xb93   :  { %2161 = vpow2.f32 %v1541_v18 }
 0xb9b   :  { %v2160_v33 = vpop.eup %2159 }
 0xb9c   :  { %788 = vrot.lane.b32.xlu0 %v2160_v33, %s2396_s7 }
 0xb9d   :  { %v2162_v16 = vpop.eup %2161 }
 0xb9e   :  { %v780_v52 = vadd.f32 1.0, %v2162_v16 }
 0xba0   :  { %2163 = vrcp.f32 %v780_v52 }
 0xbaa   :  { %v2164_v34 = vpop.eup %2163 }
 0xbab   :  { %784 = vrot.lane.b32.xlu1 %v2164_v34, %s2410_s15 }
 0xbae   :  { %v1021_v51 = vpop.f32.mrb[24].mxu0 }
 0xbaf   :  { %v1027_v36 = vadd.f32 %v1021_v51, %v900_v22  ;;  %v1923_v37 = vpop.f32.mrb[25].mxu0  ;;  %786 = vrot.lane.b32.xlu1 %v2164_v34, %s2409_s4 }
 0xbb0   :  { %v1024_v38 = vpop.f32.mrb[26].mxu0  ;;  %v908_v37 = vadd.f32 %v2746_v63, %v2834_v35 }
 0xbb1   :  { %v1557_v39 = vmul.f32 -1.442695, %v1027_v36  ;;  %2165 = vtanh.f32 %v1027_v36  ;;  %v1924_v40 = vpop.f32.mrb[27].mxu0 }
 0xbb3   :  { %2167 = vpow2.f32 %v1557_v39 }
 0xbbb   :  { %v2166_v41 = vpop.eup %2165 }
 0xbbc   :  { %1039 = vrot.lane.b32.xlu1 %v2166_v41, %s2396_s7 }
 0xbbd   :  { %v2168_v42 = vpop.eup %2167 }
 0xbbe   :  { %v1031_v43 = vadd.f32 1.0, %v2168_v42 }
 0xbc0   :  { %2169 = vrcp.f32 %v1031_v43 }
 0xbca   :  { %v2170_v44 = vpop.eup %2169 }
 0xbcb   :  { %1035 = vrot.lane.b32.xlu0 %v2170_v44, %s2410_s15 }
 0xbcf   :  { %1037 = vrot.lane.b32.xlu0 %v2170_v44, %s2409_s4 }
 0xc0e   :  { %v789_v45 = vpop.permute.xlu0 %788 }
 0xc0f   :  { %v791_v47 = vmul.f32 %v2164_v34, %v789_v45 }
 0xc1d   :  { %v785_v46 = vpop.permute.xlu1 %784 }
 0xc1e   :  { %v790_v48 = vmul.f32 %v785_v46, %v2790_v30  ;;  %v903_v30 = vadd.f32 %v2834_v35, %v2752_v6 }
 0xc20   :  { %v792_v53 = vadd.f32 %v791_v47, %v790_v48 }
 0xc21   :  { %v787_v55 = vpop.permute.xlu1 %786 }
 0xc22   :  { %2171 = vtanh.f32 %v792_v53  ;;  %799 = vst.msk [vmem:[#allocation14] sm:$0xff] %vm146_vm1, %v792_v53 }
 0xc2c   :  { %v2172_v54 = vpop.eup %2171 }
 0xc2d   :  { %v794_v20 = vmul.f32 %v2172_v54, %v787_v55 }
 0xc2e   :  { %v1040_v59 = vpop.permute.xlu1 %1039 }
 0xc2f   :  { %797 = vst.msk [vmem:[#allocation2 + $0x38] sm:$0xff] %vm146_vm1, %v794_v20  ;;  %798 = vst.msk [vmem:[#allocation13] sm:$0xff] %vm146_vm1, %v794_v20  ;;  %v1042_v61 = vmul.f32 %v2170_v44, %v1040_v59  ;;  %v911_v59 = vadd.f32 %v2750_v5, %v2834_v35 }
 0xc36   :  { %v830_v57 = vld [vmem:[#allocation2 + $0x38] sm:$0xff] }
 0xc37   :  { %v834_v58 = vpack.c.bf16 %v830_v57, %v829_v56 }
 0xc39   :  { %1902 = vmatmul.mubr.msk.bf16.gmra.mrb[20].mxu1 %vm146_vm1, %v834_v58 }
 0xc3a   :  { %1941 = vmatprep.mubr.msk.bf16.mxu1 %vm2407_vm0, %v2406_v0 }
 0xc3d   :  { %v1036_v60 = vpop.permute.xlu0 %1035 }
 0xc3e   :  { %v1041_v62 = vmul.f32 0.0, %v1036_v60 }
 0xc40   :  { %v1043_v3 = vadd.f32 %v1042_v61, %v1041_v62 }
 0xc41   :  { %v1038_v49 = vpop.permute.xlu0 %1037 }
 0xc42   :  { %2173 = vtanh.f32 %v1043_v3 }
 0xc4c   :  { %v2174_v7 = vpop.eup %2173 }
 0xc4d   :  { %v1045_v9 = vmul.f32 %v2174_v7, %v1038_v49 }
 0xc4f   :  { %v1047_v10 = vpack.c.bf16 %v1045_v9, %v1045_v9 }
 0xc51   :  { %1942 = vmatmul.mubr.bf16.vlgmr.msra.gmra.mrb[24].mxu1 %v1047_v10 }
 0xc52   :  { %1966 = vmatpush3.bf16.msra.mxu1 %v2757_v11  ;;  %1981 = vmatprep.mubr.msk.bf16.mxu1 %vm2407_vm0, %v2406_v0 }
 0xc53   :  { %1967 = vmatprep.subr.bf16.mxu1 %v2406_v0 }
 0xc56   :  { %1968 = vmatpush3.bf16.msra.mxu1 %v2761_v12 }
 0xc57   :  { %1969 = vmatprep.subr.bf16.mxu1 %v2406_v0 }
 0xc5a   :  { %1970 = vmatpush3.bf16.msra.mxu1 %v2765_v19 }
 0xc5b   :  { %1971 = vmatprep.subr.bf16.mxu1 %v2406_v0 }
 0xc5e   :  { %1972 = vmatpush3.bf16.msra.mxu1 %v2769_v21 }
 0xc5f   :  { %1973 = vmatprep.subr.bf16.mxu1 %v2406_v0 }
 0xc62   :  { %1974 = vmatpush3.bf16.msra.mxu1 %v2773_v23 }
 0xc63   :  { %1975 = vmatprep.subr.bf16.mxu1 %v2406_v0 }
 0xc66   :  { %1976 = vmatpush3.bf16.msra.mxu1 %v2777_v50 }
 0xc67   :  { %1977 = vmatprep.subr.bf16.mxu1 %v2406_v0 }
 0xc6a   :  { %1978 = vmatpush3.bf16.msra.mxu1 %v2781_v24 }
 0xc6b   :  { %1979 = vmatprep.subr.bf16.mxu1 %v2406_v0 }
 0xc6e   :  { %1980 = vmatpush3.bf16.msra.mxu1 %v2785_v25 }
 0xc6f   :  { %2005 = vmatprep.subr.bf16.mxu1 %v2406_v0 }
 0xd0c   :  { %v2868_v26 = vpop.f32.mrb[20].mxu1 }
 0xd0d   :  { %v2870_v27 = vpop.f32.mrb[21].mxu1 }
 0xd0e   :  { %v2872_v28 = vpop.f32.mrb[22].mxu1 }
 0xd0f   :  { %v2874_v29 = vpop.f32.mrb[23].mxu1 }
 0xd24   :  { %v1082_v31 = vpop.f32.mrb[24].mxu1 }
 0xd25   :  { %v1088_v1 = vadd.f32 %v1082_v31, %v903_v30  ;;  %v1943_v2 = vpop.f32.mrb[25].mxu1 }
 0xd26   :  { %v1085_v4 = vpop.f32.mrb[26].mxu1 }
 0xd27   :  { %v1558_v17 = vmul.f32 -1.442695, %v1088_v1  ;;  %2175 = vtanh.f32 %v1088_v1  ;;  %v1944_v8 = vpop.f32.mrb[27].mxu1 }
 0xd29   :  { %2177 = vpow2.f32 %v1558_v17 }
 0xd31   :  { %v2176_v13 = vpop.eup %2175 }
 0xd32   :  { %1100 = vrot.lane.b32.xlu0 %v2176_v13, %s2396_s7 }
 0xd33   :  { %v2178_v32 = vpop.eup %2177 }
 0xd34   :  { %v1092_v14 = vadd.f32 1.0, %v2178_v32 }
 0xd36   :  { %2179 = vrcp.f32 %v1092_v14 }
 0xd40   :  { %v2180_v18 = vpop.eup %2179 }
 0xd41   :  { %1096 = vrot.lane.b32.xlu1 %v2180_v18, %s2410_s15 }
 0xd45   :  { %1098 = vrot.lane.b32.xlu1 %v2180_v18, %s2409_s4 }
 0xda4   :  { %v1101_v6 = vpop.permute.xlu0 %1100 }
 0xda5   :  { %v1103_v33 = vmul.f32 %v2180_v18, %v1101_v6  ;;  %v916_v18 = vadd.f32 %v2834_v35, %v2870_v27 }
 0xdb3   :  { %v1097_v15 = vpop.permute.xlu1 %1096 }
 0xdb4   :  { %v1102_v16 = vmul.f32 %v1097_v15, %v1043_v3 }
 0xdb6   :  { %v1104_v52 = vadd.f32 %v1103_v33, %v1102_v16 }
 0xdb7   :  { %v1099_v22 = vpop.permute.xlu1 %1098 }
 0xdb8   :  { %2181 = vtanh.f32 %v1104_v52 }
 0xdc2   :  { %v2182_v34 = vpop.eup %2181 }
 0xdc3   :  { %v1106_v51 = vmul.f32 %v2182_v34, %v1099_v22 }
 0xdc5   :  { %v1108_v36 = vpack.c.bf16 %v1106_v51, %v1106_v51 }
 0xdc7   :  { %1962 = vmatmul.mubr.bf16.vlgmr.msra.gmra.mrb[28].mxu0 %v1108_v36 }
 0xdc8   :  { %1986 = vmatpush3.bf16.msra.mxu0 %v2757_v11  ;;  %2001 = vmatprep.mubr.msk.bf16.mxu0 %vm2407_vm0, %v2406_v0 }
 0xdc9   :  { %1987 = vmatprep.subr.bf16.mxu0 %v2406_v0 }
 0xdcc   :  { %1988 = vmatpush3.bf16.msra.mxu0 %v2761_v12 }
 0xdcd   :  { %1989 = vmatprep.subr.bf16.mxu0 %v2406_v0 }
 0xdd0   :  { %1990 = vmatpush3.bf16.msra.mxu0 %v2765_v19 }
 0xdd1   :  { %1991 = vmatprep.subr.bf16.mxu0 %v2406_v0 }
 0xdd4   :  { %1992 = vmatpush3.bf16.msra.mxu0 %v2769_v21 }
 0xdd5   :  { %1993 = vmatprep.subr.bf16.mxu0 %v2406_v0 }
 0xdd8   :  { %1994 = vmatpush3.bf16.msra.mxu0 %v2773_v23 }
 0xdd9   :  { %1995 = vmatprep.subr.bf16.mxu0 %v2406_v0 }
 0xddc   :  { %1996 = vmatpush3.bf16.msra.mxu0 %v2777_v50 }
 0xddd   :  { %1997 = vmatprep.subr.bf16.mxu0 %v2406_v0 }
 0xde0   :  { %1998 = vmatpush3.bf16.msra.mxu0 %v2781_v24 }
 0xde1   :  { %1999 = vmatprep.subr.bf16.mxu0 %v2406_v0 }
 0xde4   :  { %2000 = vmatpush3.bf16.msra.mxu0 %v2785_v25 }
 0xde5   :  { %2025 = vmatprep.subr.bf16.mxu0 %v2406_v0 }
 0xe9a   :  { %v1143_v38 = vpop.f32.mrb[28].mxu0 }
 0xe9b   :  { %v1149_v39 = vadd.f32 %v1143_v38, %v908_v37  ;;  %v1963_v40 = vpop.f32.mrb[29].mxu0 }
 0xe9c   :  { %v1146_v41 = vpop.f32.mrb[30].mxu0 }
 0xe9d   :  { %v1559_v42 = vmul.f32 -1.442695, %v1149_v39  ;;  %2183 = vtanh.f32 %v1149_v39  ;;  %v1964_v43 = vpop.f32.mrb[31].mxu0 }
 0xe9f   :  { %2185 = vpow2.f32 %v1559_v42 }
 0xea7   :  { %v2184_v44 = vpop.eup %2183 }
 0xea8   :  { %1161 = vrot.lane.b32.xlu1 %v2184_v44, %s2396_s7 }
 0xea9   :  { %v2186_v45 = vpop.eup %2185 }
 0xeaa   :  { %v1153_v46 = vadd.f32 1.0, %v2186_v45 }
 0xeac   :  { %2187 = vrcp.f32 %v1153_v46 }
 0xeb6   :  { %v2188_v47 = vpop.eup %2187 }
 0xeb7   :  { %1157 = vrot.lane.b32.xlu0 %v2188_v47, %s2410_s15 }
 0xebb   :  { %1159 = vrot.lane.b32.xlu0 %v2188_v47, %s2409_s4 }
 0xf1a   :  { %v1162_v63 = vpop.permute.xlu1 %1161 }
 0xf1b   :  { %v1164_v53 = vmul.f32 %v2188_v47, %v1162_v63 }
 0xf29   :  { %v1158_v48 = vpop.permute.xlu0 %1157 }
 0xf2a   :  { %v1163_v54 = vmul.f32 %v1158_v48, %v1104_v52 }
 0xf2c   :  { %v1165_v55 = vadd.f32 %v1164_v53, %v1163_v54 }
 0xf2d   :  { %v1160_v56 = vpop.permute.xlu0 %1159 }
 0xf2e   :  { %2189 = vtanh.f32 %v1165_v55 }
 0xf38   :  { %v2190_v20 = vpop.eup %2189 }
 0xf39   :  { %v1167_v57 = vmul.f32 %v2190_v20, %v1160_v56 }
 0xf3b   :  { %v1169_v58 = vpack.c.bf16 %v1167_v57, %v1167_v57 }
 0xf3d   :  { %1982 = vmatmul.mubr.bf16.vlgmr.msra.gmra.mrb[28].mxu1 %v1169_v58  ;;  %v924_v58 = vadd.f32 %v2868_v26, %v2834_v35 }
 0xf3e   :  { %2006 = vmatpush3.bf16.msra.mxu1 %v2757_v11  ;;  %2021 = vmatprep.mubr.msk.bf16.mxu1 %vm2407_vm0, %v2406_v0 }
 0xf3f   :  { %2007 = vmatprep.subr.bf16.mxu1 %v2406_v0 }
 0xf42   :  { %2008 = vmatpush3.bf16.msra.mxu1 %v2761_v12 }
 0xf43   :  { %2009 = vmatprep.subr.bf16.mxu1 %v2406_v0 }
 0xf46   :  { %2010 = vmatpush3.bf16.msra.mxu1 %v2765_v19 }
 0xf47   :  { %2011 = vmatprep.subr.bf16.mxu1 %v2406_v0 }
 0xf4a   :  { %2012 = vmatpush3.bf16.msra.mxu1 %v2769_v21 }
 0xf4b   :  { %2013 = vmatprep.subr.bf16.mxu1 %v2406_v0 }
 0xf4e   :  { %2014 = vmatpush3.bf16.msra.mxu1 %v2773_v23 }
 0xf4f   :  { %2015 = vmatprep.subr.bf16.mxu1 %v2406_v0 }
 0xf52   :  { %2016 = vmatpush3.bf16.msra.mxu1 %v2777_v50 }
 0xf53   :  { %2017 = vmatprep.subr.bf16.mxu1 %v2406_v0 }
 0xf56   :  { %2018 = vmatpush3.bf16.msra.mxu1 %v2781_v24 }
 0xf57   :  { %2019 = vmatprep.subr.bf16.mxu1 %v2406_v0 }
 0xf5a   :  { %2020 = vmatpush3.bf16.msra.mxu1 %v2785_v25 }
 0xf5b   :  { %2045 = vmatprep.subr.bf16.mxu1 %v2406_v0 }
0x1010   :  { %v1204_v60 = vpop.f32.mrb[28].mxu1 }
0x1011   :  { %v1210_v61 = vadd.f32 %v1204_v60, %v911_v59  ;;  %v1983_v62 = vpop.f32.mrb[29].mxu1 }
0x1012   :  { %v1207_v3 = vpop.f32.mrb[30].mxu1 }
0x1013   :  { %v1560_v7 = vmul.f32 -1.442695, %v1210_v61  ;;  %2191 = vtanh.f32 %v1210_v61  ;;  %v1984_v49 = vpop.f32.mrb[31].mxu1 }
0x1015   :  { %2193 = vpow2.f32 %v1560_v7 }
0x101d   :  { %v2192_v9 = vpop.eup %2191 }
0x101e   :  { %1222 = vrot.lane.b32.xlu0 %v2192_v9, %s2396_s7 }
0x101f   :  { %v2194_v10 = vpop.eup %2193 }
0x1020   :  { %v1214_v30 = vadd.f32 1.0, %v2194_v10 }
0x1022   :  { %2195 = vrcp.f32 %v1214_v30 }
0x102c   :  { %v2196_v31 = vpop.eup %2195 }
0x102d   :  { %1218 = vrot.lane.b32.xlu1 %v2196_v31, %s2410_s15 }
0x1031   :  { %1220 = vrot.lane.b32.xlu1 %v2196_v31, %s2409_s4 }
0x1090   :  { %v1223_v5 = vpop.permute.xlu0 %1222 }
0x1091   :  { %v1225_v2 = vmul.f32 %v2196_v31, %v1223_v5 }
0x109f   :  { %v1219_v1 = vpop.permute.xlu1 %1218 }
0x10a0   :  { %v1224_v4 = vmul.f32 %v1219_v1, %v1165_v55 }
0x10a2   :  { %v1226_v17 = vadd.f32 %v1225_v2, %v1224_v4 }
0x10a3   :  { %v1221_v13 = vpop.permute.xlu1 %1220 }
0x10a4   :  { %2197 = vtanh.f32 %v1226_v17 }
0x10ae   :  { %v2198_v8 = vpop.eup %2197 }
0x10af   :  { %v1228_v32 = vmul.f32 %v2198_v8, %v1221_v13 }
0x10b1   :  { %v1230_v14 = vpack.c.bf16 %v1228_v32, %v1228_v32  ;;  %v927_v32 = vadd.f32 %v2872_v28, %v2834_v35 }
0x10b3   :  { %2002 = vmatmul.mubr.bf16.vlgmr.msra.gmra.mrb[32].mxu0 %v1230_v14 }
0x10b4   :  { %2026 = vmatpush3.bf16.msra.mxu0 %v2757_v11  ;;  %2041 = vmatprep.mubr.msk.bf16.mxu0 %vm2407_vm0, %v2406_v0 }
0x10b5   :  { %2027 = vmatprep.subr.bf16.mxu0 %v2406_v0 }
0x10b8   :  { %2028 = vmatpush3.bf16.msra.mxu0 %v2761_v12 }
0x10b9   :  { %2029 = vmatprep.subr.bf16.mxu0 %v2406_v0 }
0x10bc   :  { %2030 = vmatpush3.bf16.msra.mxu0 %v2765_v19 }
0x10bd   :  { %2031 = vmatprep.subr.bf16.mxu0 %v2406_v0 }
0x10c0   :  { %2032 = vmatpush3.bf16.msra.mxu0 %v2769_v21 }
0x10c1   :  { %2033 = vmatprep.subr.bf16.mxu0 %v2406_v0 }
0x10c4   :  { %2034 = vmatpush3.bf16.msra.mxu0 %v2773_v23 }
0x10c5   :  { %2035 = vmatprep.subr.bf16.mxu0 %v2406_v0 }
0x10c8   :  { %2036 = vmatpush3.bf16.msra.mxu0 %v2777_v50 }
0x10c9   :  { %2037 = vmatprep.subr.bf16.mxu0 %v2406_v0 }
0x10cc   :  { %2038 = vmatpush3.bf16.msra.mxu0 %v2781_v24 }
0x10cd   :  { %2039 = vmatprep.subr.bf16.mxu0 %v2406_v0 }
0x10d0   :  { %2040 = vmatpush3.bf16.msra.mxu0 %v2785_v25 }
0x1186   :  { %v1265_v6 = vpop.f32.mrb[32].mxu0 }
0x1187   :  { %v1271_v15 = vadd.f32 %v1265_v6, %v916_v18  ;;  %v2003_v33 = vpop.f32.mrb[33].mxu0 }
0x1188   :  { %v1268_v16 = vpop.f32.mrb[34].mxu0 }
0x1189   :  { %v1561_v52 = vmul.f32 -1.442695, %v1271_v15  ;;  %2199 = vtanh.f32 %v1271_v15  ;;  %v2004_v34 = vpop.f32.mrb[35].mxu0 }
0x118b   :  { %2201 = vpow2.f32 %v1561_v52 }
0x1193   :  { %v2200_v22 = vpop.eup %2199 }
0x1194   :  { %1283 = vrot.lane.b32.xlu1 %v2200_v22, %s2396_s7 }
0x1195   :  { %v2202_v51 = vpop.eup %2201 }
0x1196   :  { %v1275_v36 = vadd.f32 1.0, %v2202_v51 }
0x1198   :  { %2203 = vrcp.f32 %v1275_v36 }
0x11a2   :  { %v2204_v37 = vpop.eup %2203 }
0x11a3   :  { %1279 = vrot.lane.b32.xlu0 %v2204_v37, %s2410_s15 }
0x11a7   :  { %1281 = vrot.lane.b32.xlu0 %v2204_v37, %s2409_s4 }
0x1206   :  { %v1284_v27 = vpop.permute.xlu1 %1283 }
0x1207   :  { %v1286_v39 = vmul.f32 %v2204_v37, %v1284_v27 }
0x1215   :  { %v1280_v38 = vpop.permute.xlu0 %1279 }
0x1216   :  { %v1285_v40 = vmul.f32 %v1280_v38, %v1226_v17 }
0x1218   :  { %v1287_v41 = vadd.f32 %v1286_v39, %v1285_v40 }
0x1219   :  { %v1282_v43 = vpop.permute.xlu0 %1281 }
0x121a   :  { %2205 = vtanh.f32 %v1287_v41 }
0x1224   :  { %v2206_v42 = vpop.eup %2205 }
0x1225   :  { %v1289_v44 = vmul.f32 %v2206_v42, %v1282_v43 }
0x1227   :  { %v1291_v45 = vpack.c.bf16 %v1289_v44, %v1289_v44 }
0x1229   :  { %2022 = vmatmul.mubr.bf16.vlgmr.msra.gmra.mrb[32].mxu1 %v1291_v45 }
0x122a   :  { %2046 = vmatpush3.bf16.msra.mxu1 %v2757_v11  ;;  %2061 = vmatprep.mubr.msk.bf16.mxu1 %vm2407_vm0, %v2406_v0  ;;  %v919_v11 = vadd.f32 %v2834_v35, %v2874_v29 }
0x122b   :  { %2047 = vmatprep.subr.bf16.mxu1 %v2406_v0 }
0x122e   :  { %2048 = vmatpush3.bf16.msra.mxu1 %v2761_v12 }
0x122f   :  { %2049 = vmatprep.subr.bf16.mxu1 %v2406_v0 }
0x1232   :  { %2050 = vmatpush3.bf16.msra.mxu1 %v2765_v19 }
0x1233   :  { %2051 = vmatprep.subr.bf16.mxu1 %v2406_v0 }
0x1236   :  { %2052 = vmatpush3.bf16.msra.mxu1 %v2769_v21 }
0x1237   :  { %2053 = vmatprep.subr.bf16.mxu1 %v2406_v0 }
0x123a   :  { %2054 = vmatpush3.bf16.msra.mxu1 %v2773_v23 }
0x123b   :  { %2055 = vmatprep.subr.bf16.mxu1 %v2406_v0 }
0x123e   :  { %2056 = vmatpush3.bf16.msra.mxu1 %v2777_v50 }
0x123f   :  { %2057 = vmatprep.subr.bf16.mxu1 %v2406_v0 }
0x1242   :  { %2058 = vmatpush3.bf16.msra.mxu1 %v2781_v24 }
0x1243   :  { %2059 = vmatprep.subr.bf16.mxu1 %v2406_v0 }
0x1246   :  { %2060 = vmatpush3.bf16.msra.mxu1 %v2785_v25 }
0x12fc   :  { %v1326_v12 = vpop.f32.mrb[32].mxu1 }
0x12fd   :  { %v1332_v19 = vadd.f32 %v1326_v12, %v919_v11  ;;  %v2023_v21 = vpop.f32.mrb[33].mxu1 }
0x12fe   :  { %v1329_v46 = vpop.f32.mrb[34].mxu1 }
0x12ff   :  { %v1562_v23 = vmul.f32 -1.442695, %v1332_v19  ;;  %2207 = vtanh.f32 %v1332_v19  ;;  %v2024_v47 = vpop.f32.mrb[35].mxu1 }
0x1301   :  { %2209 = vpow2.f32 %v1562_v23 }
0x1309   :  { %v2208_v50 = vpop.eup %2207 }
0x130a   :  { %1344 = vrot.lane.b32.xlu0 %v2208_v50, %s2396_s7 }
0x130b   :  { %v2210_v63 = vpop.eup %2209 }
0x130c   :  { %v1336_v24 = vadd.f32 1.0, %v2210_v63 }
0x130e   :  { %2211 = vrcp.f32 %v1336_v24 }
0x1318   :  { %v2212_v0 = vpop.eup %2211 }
0x1319   :  { %1340 = vrot.lane.b32.xlu1 %v2212_v0, %s2410_s15 }
0x131d   :  { %1342 = vrot.lane.b32.xlu1 %v2212_v0, %s2409_s4 }
0x137c   :  { %v1345_v25 = vpop.permute.xlu0 %1344 }
0x137d   :  { %v1347_v48 = vmul.f32 %v2212_v0, %v1345_v25 }
0x138b   :  { %v1341_v29 = vpop.permute.xlu1 %1340 }
0x138c   :  { %v1346_v53 = vmul.f32 %v1341_v29, %v1287_v41 }
0x138e   :  { %v1348_v54 = vadd.f32 %v1347_v48, %v1346_v53 }
0x138f   :  { %v1343_v20 = vpop.permute.xlu1 %1342 }
0x1390   :  { %2213 = vtanh.f32 %v1348_v54 }
0x139a   :  { %v2214_v55 = vpop.eup %2213 }
0x139b   :  { %v1350_v56 = vmul.f32 %v2214_v55, %v1343_v20 }
0x139d   :  { %v1352_v57 = vpack.c.bf16 %v1350_v56, %v1350_v56 }
0x139f   :  { %2042 = vmatmul.mubr.bf16.vlgmr.msra.gmra.mrb[36].mxu0 %v1352_v57 }
0x1472   :  { %v1387_v59 = vpop.f32.mrb[36].mxu0 }
0x1473   :  { %v1393_v60 = vadd.f32 %v1387_v59, %v924_v58  ;;  %v2043_v61 = vpop.f32.mrb[37].mxu0 }
0x1474   :  { %v1390_v62 = vpop.f32.mrb[38].mxu0 }
0x1475   :  { %v1563_v3 = vmul.f32 -1.442695, %v1393_v60  ;;  %2215 = vtanh.f32 %v1393_v60  ;;  %v2044_v7 = vpop.f32.mrb[39].mxu0 }
0x1477   :  { %2217 = vpow2.f32 %v1563_v3 }
0x147f   :  { %v2216_v49 = vpop.eup %2215 }
0x1480   :  { %1405 = vrot.lane.b32.xlu1 %v2216_v49, %s2396_s7 }
0x1481   :  { %v2218_v9 = vpop.eup %2217 }
0x1482   :  { %v1397_v10 = vadd.f32 1.0, %v2218_v9 }
0x1484   :  { %2219 = vrcp.f32 %v1397_v10 }
0x148e   :  { %v2220_v30 = vpop.eup %2219 }
0x148f   :  { %1401 = vrot.lane.b32.xlu0 %v2220_v30, %s2410_s15 }
0x1493   :  { %1403 = vrot.lane.b32.xlu0 %v2220_v30, %s2409_s4 }
0x14f2   :  { %v1406_v26 = vpop.permute.xlu1 %1405 }
0x14f3   :  { %v1408_v5 = vmul.f32 %v2220_v30, %v1406_v26 }
0x1501   :  { %v1402_v31 = vpop.permute.xlu0 %1401 }
0x1502   :  { %v1407_v1 = vmul.f32 %v1402_v31, %v1348_v54 }
0x1504   :  { %v1409_v2 = vadd.f32 %v1408_v5, %v1407_v1 }
0x1505   :  { %v1404_v17 = vpop.permute.xlu0 %1403 }
0x1506   :  { %2221 = vtanh.f32 %v1409_v2 }
0x1510   :  { %v2222_v4 = vpop.eup %2221 }
0x1511   :  { %v1411_v8 = vmul.f32 %v2222_v4, %v1404_v17 }
0x1513   :  { %v1413_v13 = vpack.c.bf16 %v1411_v8, %v1411_v8 }
0x1515   :  { %2062 = vmatmul.mubr.bf16.vlgmr.msra.gmra.mrb[36].mxu1 %v1413_v13 }
0x15e8   :  { %v1448_v14 = vpop.f32.mrb[36].mxu1 }
0x15e9   :  { %v1454_v18 = vadd.f32 %v1448_v14, %v927_v32  ;;  %v2063_v6 = vpop.f32.mrb[37].mxu1 }
0x15ea   :  { %v1451_v15 = vpop.f32.mrb[38].mxu1 }
0x15eb   :  { %v1564_v33 = vmul.f32 -1.442695, %v1454_v18  ;;  %2223 = vtanh.f32 %v1454_v18  ;;  %v2064_v16 = vpop.f32.mrb[39].mxu1 }
0x15ed   :  { %2225 = vpow2.f32 %v1564_v33 }
0x15f5   :  { %v2224_v52 = vpop.eup %2223 }
0x15f6   :  { %1466 = vrot.lane.b32.xlu0 %v2224_v52, %s2396_s7  ;;  %s2341_s7 = scalar_lea.vmem %s1495_s17, 256 }
0x15f7   :  { %v2226_v34 = vpop.eup %2225  ;;  %p2342_p12 = scmp.ne.s32.totalorder %s1495_s17, %s2341_s7  ;;  %p2347_p0 = scmp.lt.s32.totalorder %s2341_s7, %s2341_s7 }
0x15f8   :  { %v1458_v22 = vadd.f32 1.0, %v2226_v34 }
0x15f9   :  { %p2348_p1 = por %p2347_p0, %p2346_p13 }
0x15fa   :  { %2227 = vrcp.f32 %v1458_v22 }
0x15fb   :  { %p2349_p2 = pnand %p2348_p1, %p2342_p12 }
0x1604   :  { %v2228_v51 = vpop.eup %2227 }
0x1605   :  { %1462 = vrot.lane.b32.xlu1 %v2228_v51, %s2410_s15 }
0x1609   :  { %1464 = vrot.lane.b32.xlu1 %v2228_v51, %s2409_s4 }
0x1668   :  { %v1467_v35 = vpop.permute.xlu0 %1466 }
0x1669   :  { %v1469_v36 = vmul.f32 %v2228_v51, %v1467_v35 }
0x1677   :  { %v1463_v28 = vpop.permute.xlu1 %1462 }
0x1678   :  { %v1468_v37 = vmul.f32 %v1463_v28, %v1409_v2 }
0x167a   :  { %v1470_v27 = vadd.f32 %v1469_v36, %v1468_v37 }
0x167c   :  { %2229 = vtanh.f32 %v1470_v27  ;;  %1476 = vst.msk [vmem:[#allocation14 + $0x8] sm:$0xff] %vm146_vm1, %v1470_v27 }
0x167d   :  { %2352 = shalt.err (!%p2349_p2)
}
0x167e   :  { %s2353_s20 = scalar_lea.hbm %s3019_s6, 256 }
0x167f   :  { %p2354_p3 = scmp.ne.s32.totalorder %s3019_s6, %s2353_s20  ;;  %p2357_p4 = scmp.lt.u32.totalorder %s2353_s20, %s3019_s6 }
0x1681   :  { %p2359_p5 = pnand %p2357_p4, %p2354_p3 }
0x1683   :  { %2362 = shalt.err (!%p2359_p5)
}
0x1684   :  { %1500 = dma.vmem_to_hbm [thread:$0]  %s1495_s17, 256, %s3019_s6, [#allocation15], %s2400_s3, %s2400_s3, %s2401_s10   ;;  %v1465_v39 = vpop.permute.xlu1 %1464 }
0x1685   :  { %s2412_s24 = smov [#allocation13]  }
0x1686   :  { %s1482_s25 = sshll.u32 %s2412_s24, 4  ;;  %v2230_v38 = vpop.eup %2229  ;;  %s1483_s25 = int_to_ptr.vmem [resolvable:$true] %s1482_s25 }
0x1687   :  { %v1472_v40 = vmul.f32 %v2230_v38, %v1465_v39  ;;  %s2363_s26 = scalar_lea.vmem %s1483_s25, 256  ;;  %p2368_p7 = scmp.lt.s32.totalorder %s1483_s25, %s1483_s25 }
0x1688   :  { %p2364_p6 = scmp.ne.s32.totalorder %s1483_s25, %s2363_s26  ;;  %p2369_p8 = scmp.lt.s32.totalorder %s2363_s26, %s2363_s26 }
0x1689   :  { %1474 = vst.msk [vmem:[#allocation13 + $0x8] sm:$0xff] %vm146_vm1, %v1472_v40 }
0x168a   :  { %p2370_p9 = por %p2369_p8, %p2368_p7 }
0x168c   :  { %p2371_p10 = pnand %p2370_p9, %p2364_p6 }
0x168e   :  { %2374 = shalt.err (!%p2371_p10)
}
0x168f   :  { %s2375_s29 = scalar_lea.hbm %s3018_s5, 256 }
0x1690   :  { %p2376_p11 = scmp.ne.s32.totalorder %s3018_s5, %s2375_s29  ;;  %p2379_p12 = scmp.lt.u32.totalorder %s2375_s29, %s3018_s5 }
0x1692   :  { %p2381_p13 = pnand %p2379_p12, %p2376_p11 }
0x1694   :  { %2384 = shalt.err (!%p2381_p13)
}
0x1695   :  { %1488 = dma.vmem_to_hbm [thread:$0]  %s1483_s25, 256, %s3018_s5, [#allocation6], %s2400_s3, %s2400_s3, %s2401_s10  }
0x1696   :  { %2391 = dma.done.wait [#allocation6], 256  }
0x1697   :  { %2392 = vsyncadd [#allocation6], 4294967040 }
0x1698   :  { %2393 = dma.done.wait [#allocation15], 256  }
0x1699   :  { %2394 = vsyncadd [#allocation15], 4294967040 }
0x169a   :  { %1507 = vsyncpa [#allocation5], 1 }
0x169b   :  { %1508 = vsyncpa [#allocation8], 1 }
0x169c   :  { %1509 = vsyncpa [#allocation11], 1 }
0x169d   :  { %1510 = vsyncpa [#allocation6], 1 }
0x169e   :  { %1511 = vsyncpa [#allocation15], 1 }

</bundles_post_ra>
